<compile_context>
chip_gen: v6e
topology: v6e:2x2x1
jax: 0.10.0
libtpu: 0.0.40
codegen_flags: <defaults>
</compile_context>

<pallas_src>
import functools

import jax
import jax.numpy as jnp
import numpy as np
from jax import lax
from jax.experimental import pallas as pl
from jax.experimental.pallas import tpu as pltpu

NF = 5          # hidden feature channels (nf)
C_IN = 3        # Ax_cur, u, y (conceptually stacked)
C_OUT = 1
K = 3           # conv kernel size
ROWS = 8        # rows per inner sub-chunk (fills the 8 sublanes of an f32 vreg)


def _round_up(x, m):
    return ((x + m - 1) // m) * m


def dualblock_kernel(ax_ref, u_ref, y_ref,
                     w_in_ref, b_in_ref, w_mid_ref, b_mid_ref,
                     w_out_ref, b_out_ref, o_ref, *, l_valid):
    bt, lp = ax_ref.shape
    n_chunks = bt // ROWS

    # Hoist all SMEM weight/bias scalar reads out of the chunk loop (read once
    # per grid step instead of once per 8-row chunk).
    w_in = [w_in_ref[i] for i in range(NF * C_IN * K)]
    b_in = [b_in_ref[i] for i in range(NF)]
    w_mid = [w_mid_ref[i] for i in range(NF * NF * K)]
    b_mid = [b_mid_ref[i] for i in range(NF)]
    w_out = [w_out_ref[i] for i in range(C_OUT * NF * K)]
    b_out = [b_out_ref[i] for i in range(C_OUT)]

    # Valid-lane mask (row independent, computed once).  The wrapper guarantees
    # at least one zeroed pad lane past l_valid, so the circular rolls below
    # read zeros at the true signal edges; only hidden activations need their
    # pad lanes re-zeroed once per layer.
    lane = lax.broadcasted_iota(jnp.int32, (ROWS, lp), 1)
    mask_valid = lane < l_valid

    def conv_layer(inputs, w, b, cout, cin, relu_and_zero):
        # ci-outer / co-inner: the two lane rotations per input channel are
        # computed once and reused for every output channel; bias is folded
        # into the first (ci == 0) contribution.
        accs = [None] * cout
        for ci in range(cin):
            v = inputs[ci]
            left = pltpu.roll(v, shift=1, axis=1)         # v[l-1] (lane 0 reads a zero pad lane)
            right = pltpu.roll(v, shift=lp - 1, axis=1)   # v[l+1] (lane L-1 reads a zero pad lane)
            for co in range(cout):
                base = (co * cin + ci) * K
                contrib = w[base] * left + w[base + 1] * v + w[base + 2] * right
                if accs[co] is None:
                    accs[co] = b[co] + contrib
                else:
                    accs[co] = accs[co] + contrib
        if relu_and_zero:
            # ReLU + re-zero pad lanes so the next layer's circular rolls stay correct.
            accs = [jnp.where(mask_valid, jnp.maximum(a, 0.0), 0.0) for a in accs]
        return accs

    def process(r0):
        rows = pl.ds(r0, ROWS)
        x0 = [ax_ref[rows, :].astype(jnp.float32),
              u_ref[rows, :].astype(jnp.float32),
              y_ref[rows, :].astype(jnp.float32)]
        h = conv_layer(x0, w_in, b_in, NF, C_IN, relu_and_zero=True)      # in_conv + ReLU
        h = conv_layer(h, w_mid, b_mid, NF, NF, relu_and_zero=True)       # conv_list[0] + ReLU
        out = conv_layer(h, w_out, b_out, C_OUT, NF, relu_and_zero=False)[0]  # out_conv
        # Residual (+ Ax_cur channel): re-read the ref rather than holding ax live.
        o_ref[rows, :] = out + ax_ref[rows, :].astype(jnp.float32)

    def body(c, carry):
        process(pl.multiple_of(c * ROWS, ROWS))
        return carry

    lax.fori_loop(0, n_chunks, body, 0)


def dualblock_forward(Ax, u, y, params):
    w_in, b_in, w_mid, b_mid, w_out, b_out = params
    B, L = Ax.shape

    # Lane padding: always keep >= 1 zero pad lane (even when L % 128 == 0) so
    # the in-kernel circular rolls read zeros at the signal edges.
    L_pad = _round_up(L + 1, 128)

    # Batch tile: biggest multiple of 8 whose double-buffered I/O footprint
    # (2 bufs x (3 in + 1 out) x rows x L_pad x 4 B) stays under ~24 MiB,
    # capped at 256 rows (safe on v7x's 64 MiB VMEM, generous on v5e/v6e).
    io_budget = 24 * 1024 * 1024
    max_rows = max(ROWS, (io_budget // (2 * 4 * 4 * L_pad)) // ROWS * ROWS)
    b_tile = int(min(_round_up(B, ROWS), 256, max_rows))
    B_pad = _round_up(B, b_tile)

    def pad2(a):
        # Keep the caller dtype (bf16 inputs stay bf16 on the wire; the kernel
        # upcasts after the DMA).  Padding is always needed on L (>= 1 pad lane).
        if a.shape == (B_pad, L_pad):
            return a
        return jnp.pad(a, ((0, B_pad - B), (0, L_pad - L)))

    Axp, up, yp = pad2(Ax), pad2(u), pad2(y)

    grid = (B_pad // b_tile,)
    blk = pl.BlockSpec((b_tile, L_pad), lambda i: (i, 0))
    smem = pl.BlockSpec(memory_space=pltpu.MemorySpace.SMEM)

    kernel = functools.partial(dualblock_kernel, l_valid=L)

    out = pl.pallas_call(
        kernel,
        out_shape=jax.ShapeDtypeStruct((B_pad, L_pad), jnp.float32),
        grid=grid,
        in_specs=[blk, blk, blk, smem, smem, smem, smem, smem, smem],
        out_specs=blk,
        compiler_params=pltpu.CompilerParams(
            dimension_semantics=("parallel",),
            vmem_limit_bytes=48 * 1024 * 1024,
        ),
    )(Axp, up, yp,
      w_in.reshape(-1).astype(jnp.float32), b_in.astype(jnp.float32),
      w_mid.reshape(-1).astype(jnp.float32), b_mid.astype(jnp.float32),
      w_out.reshape(-1).astype(jnp.float32), b_out.astype(jnp.float32))

    return out[:B, :L]


def dualblock_reference(Ax, u, y, params):
    """Pure-JAX reference matching the PyTorch forward semantics."""
    w_in, b_in, w_mid, b_mid, w_out, b_out = params
    x = jnp.stack([Ax, u, y], axis=1)  # (B, 3, L)

    def conv1d(x, w, b):
        out = lax.conv_general_dilated(
            x, w, window_strides=(1,), padding=((1, 1),),
            dimension_numbers=('NCH', 'OIH', 'NCH'))
        return out + b[None, :, None]

    h = jax.nn.relu(conv1d(x, w_in, b_in))
    h = jax.nn.relu(conv1d(h, w_mid, b_mid))
    out = conv1d(h, w_out, b_out) + x[:, 0:1, :]
    return out[:, 0, :]


def init_params(key):
    ks = jax.random.split(key, 6)

    def u(k, shape, fan_in):
        bound = 1.0 / np.sqrt(fan_in)
        return jax.random.uniform(k, shape, jnp.float32, -bound, bound)

    w_in = u(ks[0], (NF, C_IN, K), C_IN * K)
    b_in = u(ks[1], (NF,), C_IN * K)
    w_mid = u(ks[2], (NF, NF, K), NF * K)
    b_mid = u(ks[3], (NF,), NF * K)
    w_out = u(ks[4], (C_OUT, NF, K), NF * K)
    b_out = u(ks[5], (C_OUT,), NF * K)
    return (w_in, b_in, w_mid, b_mid, w_out, b_out)


if __name__ == "__main__":
    key = jax.random.PRNGKey(0)
    kp, ka, ku, ky = jax.random.split(key, 4)

    B, L = 2, 128
    params = init_params(kp)
    Ax = jax.random.normal(ka, (B, L), jnp.float32)
    u_ = jax.random.normal(ku, (B, L), jnp.float32)
    y = jax.random.normal(ky, (B, L), jnp.float32)

    out = dualblock_forward(Ax, u_, y, params)
    out = jax.block_until_ready(out)

    ref = jax.block_until_ready(dualblock_reference(Ax, u_, y, params))
    assert out.shape == (B, L)
    assert np.allclose(np.asarray(out), np.asarray(ref), atol=1e-5, rtol=1e-5), \
        "Pallas kernel mismatch vs JAX reference"

    print("KERNEL_OK")
</pallas_src>

<mosaic_0001>
module attributes {stable_mosaic.version = 11 : i64} {
  func.func @dualblock_kernel(%arg0: i32, %arg1: memref<8x256xf32, #tpu.memory_space<vmem>>, %arg2: memref<8x256xf32, #tpu.memory_space<vmem>>, %arg3: memref<8x256xf32, #tpu.memory_space<vmem>>, %arg4: memref<45xf32, #tpu.memory_space<smem>>, %arg5: memref<5xf32, #tpu.memory_space<smem>>, %arg6: memref<75xf32, #tpu.memory_space<smem>>, %arg7: memref<5xf32, #tpu.memory_space<smem>>, %arg8: memref<15xf32, #tpu.memory_space<smem>>, %arg9: memref<1xf32, #tpu.memory_space<smem>>, %arg10: memref<8x256xf32, #tpu.memory_space<vmem>>) attributes {dimension_semantics = [#tpu.dimension_semantics<parallel>], iteration_bounds = array<i64: 1>, scalar_prefetch = 0 : i64, scratch_operands = 0 : i64, tpu.core_type = #tpu.core_type<tc>, window_params = [{transform_indices = @transform_0, window_bounds = array<i64: 8, 256>}, {transform_indices = @transform_1, window_bounds = array<i64: 8, 256>}, {transform_indices = @transform_2, window_bounds = array<i64: 8, 256>}, {transform_indices = @transform_3, window_bounds = array<i64: 45>}, {transform_indices = @transform_4, window_bounds = array<i64: 5>}, {transform_indices = @transform_5, window_bounds = array<i64: 75>}, {transform_indices = @transform_6, window_bounds = array<i64: 5>}, {transform_indices = @transform_7, window_bounds = array<i64: 15>}, {transform_indices = @transform_8, window_bounds = array<i64: 1>}, {transform_indices = @transform_9, window_bounds = array<i64: 8, 256>}]} {
    %c0 = arith.constant 0 : index
    %0 = memref.load %arg4[%c0] : memref<45xf32, #tpu.memory_space<smem>>
    %c1 = arith.constant 1 : index
    %1 = memref.load %arg4[%c1] : memref<45xf32, #tpu.memory_space<smem>>
    %c2 = arith.constant 2 : index
    %2 = memref.load %arg4[%c2] : memref<45xf32, #tpu.memory_space<smem>>
    %c3 = arith.constant 3 : index
    %3 = memref.load %arg4[%c3] : memref<45xf32, #tpu.memory_space<smem>>
    %c4 = arith.constant 4 : index
    %4 = memref.load %arg4[%c4] : memref<45xf32, #tpu.memory_space<smem>>
    %c5 = arith.constant 5 : index
    %5 = memref.load %arg4[%c5] : memref<45xf32, #tpu.memory_space<smem>>
    %c6 = arith.constant 6 : index
    %6 = memref.load %arg4[%c6] : memref<45xf32, #tpu.memory_space<smem>>
    %c7 = arith.constant 7 : index
    %7 = memref.load %arg4[%c7] : memref<45xf32, #tpu.memory_space<smem>>
    %c8 = arith.constant 8 : index
    %8 = memref.load %arg4[%c8] : memref<45xf32, #tpu.memory_space<smem>>
    %c9 = arith.constant 9 : index
    %9 = memref.load %arg4[%c9] : memref<45xf32, #tpu.memory_space<smem>>
    %c10 = arith.constant 10 : index
    %10 = memref.load %arg4[%c10] : memref<45xf32, #tpu.memory_space<smem>>
    %c11 = arith.constant 11 : index
    %11 = memref.load %arg4[%c11] : memref<45xf32, #tpu.memory_space<smem>>
    %c12 = arith.constant 12 : index
    %12 = memref.load %arg4[%c12] : memref<45xf32, #tpu.memory_space<smem>>
    %c13 = arith.constant 13 : index
    %13 = memref.load %arg4[%c13] : memref<45xf32, #tpu.memory_space<smem>>
    %c14 = arith.constant 14 : index
    %14 = memref.load %arg4[%c14] : memref<45xf32, #tpu.memory_space<smem>>
    %c15 = arith.constant 15 : index
    %15 = memref.load %arg4[%c15] : memref<45xf32, #tpu.memory_space<smem>>
    %c16 = arith.constant 16 : index
    %16 = memref.load %arg4[%c16] : memref<45xf32, #tpu.memory_space<smem>>
    %c17 = arith.constant 17 : index
    %17 = memref.load %arg4[%c17] : memref<45xf32, #tpu.memory_space<smem>>
    %c18 = arith.constant 18 : index
    %18 = memref.load %arg4[%c18] : memref<45xf32, #tpu.memory_space<smem>>
    %c19 = arith.constant 19 : index
    %19 = memref.load %arg4[%c19] : memref<45xf32, #tpu.memory_space<smem>>
    %c20 = arith.constant 20 : index
    %20 = memref.load %arg4[%c20] : memref<45xf32, #tpu.memory_space<smem>>
    %c21 = arith.constant 21 : index
    %21 = memref.load %arg4[%c21] : memref<45xf32, #tpu.memory_space<smem>>
    %c22 = arith.constant 22 : index
    %22 = memref.load %arg4[%c22] : memref<45xf32, #tpu.memory_space<smem>>
    %c23 = arith.constant 23 : index
    %23 = memref.load %arg4[%c23] : memref<45xf32, #tpu.memory_space<smem>>
    %c24 = arith.constant 24 : index
    %24 = memref.load %arg4[%c24] : memref<45xf32, #tpu.memory_space<smem>>
    %c25 = arith.constant 25 : index
    %25 = memref.load %arg4[%c25] : memref<45xf32, #tpu.memory_space<smem>>
    %c26 = arith.constant 26 : index
    %26 = memref.load %arg4[%c26] : memref<45xf32, #tpu.memory_space<smem>>
    %c27 = arith.constant 27 : index
    %27 = memref.load %arg4[%c27] : memref<45xf32, #tpu.memory_space<smem>>
    %c28 = arith.constant 28 : index
    %28 = memref.load %arg4[%c28] : memref<45xf32, #tpu.memory_space<smem>>
    %c29 = arith.constant 29 : index
    %29 = memref.load %arg4[%c29] : memref<45xf32, #tpu.memory_space<smem>>
    %c30 = arith.constant 30 : index
    %30 = memref.load %arg4[%c30] : memref<45xf32, #tpu.memory_space<smem>>
    %c31 = arith.constant 31 : index
    %31 = memref.load %arg4[%c31] : memref<45xf32, #tpu.memory_space<smem>>
    %c32 = arith.constant 32 : index
    %32 = memref.load %arg4[%c32] : memref<45xf32, #tpu.memory_space<smem>>
    %c33 = arith.constant 33 : index
    %33 = memref.load %arg4[%c33] : memref<45xf32, #tpu.memory_space<smem>>
    %c34 = arith.constant 34 : index
    %34 = memref.load %arg4[%c34] : memref<45xf32, #tpu.memory_space<smem>>
    %c35 = arith.constant 35 : index
    %35 = memref.load %arg4[%c35] : memref<45xf32, #tpu.memory_space<smem>>
    %c36 = arith.constant 36 : index
    %36 = memref.load %arg4[%c36] : memref<45xf32, #tpu.memory_space<smem>>
    %c37 = arith.constant 37 : index
    %37 = memref.load %arg4[%c37] : memref<45xf32, #tpu.memory_space<smem>>
    %c38 = arith.constant 38 : index
    %38 = memref.load %arg4[%c38] : memref<45xf32, #tpu.memory_space<smem>>
    %c39 = arith.constant 39 : index
    %39 = memref.load %arg4[%c39] : memref<45xf32, #tpu.memory_space<smem>>
    %c40 = arith.constant 40 : index
    %40 = memref.load %arg4[%c40] : memref<45xf32, #tpu.memory_space<smem>>
    %c41 = arith.constant 41 : index
    %41 = memref.load %arg4[%c41] : memref<45xf32, #tpu.memory_space<smem>>
    %c42 = arith.constant 42 : index
    %42 = memref.load %arg4[%c42] : memref<45xf32, #tpu.memory_space<smem>>
    %c43 = arith.constant 43 : index
    %43 = memref.load %arg4[%c43] : memref<45xf32, #tpu.memory_space<smem>>
    %c44 = arith.constant 44 : index
    %44 = memref.load %arg4[%c44] : memref<45xf32, #tpu.memory_space<smem>>
    %c0_0 = arith.constant 0 : index
    %45 = memref.load %arg5[%c0_0] : memref<5xf32, #tpu.memory_space<smem>>
    %c1_1 = arith.constant 1 : index
    %46 = memref.load %arg5[%c1_1] : memref<5xf32, #tpu.memory_space<smem>>
    %c2_2 = arith.constant 2 : index
    %47 = memref.load %arg5[%c2_2] : memref<5xf32, #tpu.memory_space<smem>>
    %c3_3 = arith.constant 3 : index
    %48 = memref.load %arg5[%c3_3] : memref<5xf32, #tpu.memory_space<smem>>
    %c4_4 = arith.constant 4 : index
    %49 = memref.load %arg5[%c4_4] : memref<5xf32, #tpu.memory_space<smem>>
    %c0_5 = arith.constant 0 : index
    %50 = memref.load %arg6[%c0_5] : memref<75xf32, #tpu.memory_space<smem>>
    %c1_6 = arith.constant 1 : index
    %51 = memref.load %arg6[%c1_6] : memref<75xf32, #tpu.memory_space<smem>>
    %c2_7 = arith.constant 2 : index
    %52 = memref.load %arg6[%c2_7] : memref<75xf32, #tpu.memory_space<smem>>
    %c3_8 = arith.constant 3 : index
    %53 = memref.load %arg6[%c3_8] : memref<75xf32, #tpu.memory_space<smem>>
    %c4_9 = arith.constant 4 : index
    %54 = memref.load %arg6[%c4_9] : memref<75xf32, #tpu.memory_space<smem>>
    %c5_10 = arith.constant 5 : index
    %55 = memref.load %arg6[%c5_10] : memref<75xf32, #tpu.memory_space<smem>>
    %c6_11 = arith.constant 6 : index
    %56 = memref.load %arg6[%c6_11] : memref<75xf32, #tpu.memory_space<smem>>
    %c7_12 = arith.constant 7 : index
    %57 = memref.load %arg6[%c7_12] : memref<75xf32, #tpu.memory_space<smem>>
    %c8_13 = arith.constant 8 : index
    %58 = memref.load %arg6[%c8_13] : memref<75xf32, #tpu.memory_space<smem>>
    %c9_14 = arith.constant 9 : index
    %59 = memref.load %arg6[%c9_14] : memref<75xf32, #tpu.memory_space<smem>>
    %c10_15 = arith.constant 10 : index
    %60 = memref.load %arg6[%c10_15] : memref<75xf32, #tpu.memory_space<smem>>
    %c11_16 = arith.constant 11 : index
    %61 = memref.load %arg6[%c11_16] : memref<75xf32, #tpu.memory_space<smem>>
    %c12_17 = arith.constant 12 : index
    %62 = memref.load %arg6[%c12_17] : memref<75xf32, #tpu.memory_space<smem>>
    %c13_18 = arith.constant 13 : index
    %63 = memref.load %arg6[%c13_18] : memref<75xf32, #tpu.memory_space<smem>>
    %c14_19 = arith.constant 14 : index
    %64 = memref.load %arg6[%c14_19] : memref<75xf32, #tpu.memory_space<smem>>
    %c15_20 = arith.constant 15 : index
    %65 = memref.load %arg6[%c15_20] : memref<75xf32, #tpu.memory_space<smem>>
    %c16_21 = arith.constant 16 : index
    %66 = memref.load %arg6[%c16_21] : memref<75xf32, #tpu.memory_space<smem>>
    %c17_22 = arith.constant 17 : index
    %67 = memref.load %arg6[%c17_22] : memref<75xf32, #tpu.memory_space<smem>>
    %c18_23 = arith.constant 18 : index
    %68 = memref.load %arg6[%c18_23] : memref<75xf32, #tpu.memory_space<smem>>
    %c19_24 = arith.constant 19 : index
    %69 = memref.load %arg6[%c19_24] : memref<75xf32, #tpu.memory_space<smem>>
    %c20_25 = arith.constant 20 : index
    %70 = memref.load %arg6[%c20_25] : memref<75xf32, #tpu.memory_space<smem>>
    %c21_26 = arith.constant 21 : index
    %71 = memref.load %arg6[%c21_26] : memref<75xf32, #tpu.memory_space<smem>>
    %c22_27 = arith.constant 22 : index
    %72 = memref.load %arg6[%c22_27] : memref<75xf32, #tpu.memory_space<smem>>
    %c23_28 = arith.constant 23 : index
    %73 = memref.load %arg6[%c23_28] : memref<75xf32, #tpu.memory_space<smem>>
    %c24_29 = arith.constant 24 : index
    %74 = memref.load %arg6[%c24_29] : memref<75xf32, #tpu.memory_space<smem>>
    %c25_30 = arith.constant 25 : index
    %75 = memref.load %arg6[%c25_30] : memref<75xf32, #tpu.memory_space<smem>>
    %c26_31 = arith.constant 26 : index
    %76 = memref.load %arg6[%c26_31] : memref<75xf32, #tpu.memory_space<smem>>
    %c27_32 = arith.constant 27 : index
    %77 = memref.load %arg6[%c27_32] : memref<75xf32, #tpu.memory_space<smem>>
    %c28_33 = arith.constant 28 : index
    %78 = memref.load %arg6[%c28_33] : memref<75xf32, #tpu.memory_space<smem>>
    %c29_34 = arith.constant 29 : index
    %79 = memref.load %arg6[%c29_34] : memref<75xf32, #tpu.memory_space<smem>>
    %c30_35 = arith.constant 30 : index
    %80 = memref.load %arg6[%c30_35] : memref<75xf32, #tpu.memory_space<smem>>
    %c31_36 = arith.constant 31 : index
    %81 = memref.load %arg6[%c31_36] : memref<75xf32, #tpu.memory_space<smem>>
    %c32_37 = arith.constant 32 : index
    %82 = memref.load %arg6[%c32_37] : memref<75xf32, #tpu.memory_space<smem>>
    %c33_38 = arith.constant 33 : index
    %83 = memref.load %arg6[%c33_38] : memref<75xf32, #tpu.memory_space<smem>>
    %c34_39 = arith.constant 34 : index
    %84 = memref.load %arg6[%c34_39] : memref<75xf32, #tpu.memory_space<smem>>
    %c35_40 = arith.constant 35 : index
    %85 = memref.load %arg6[%c35_40] : memref<75xf32, #tpu.memory_space<smem>>
    %c36_41 = arith.constant 36 : index
    %86 = memref.load %arg6[%c36_41] : memref<75xf32, #tpu.memory_space<smem>>
    %c37_42 = arith.constant 37 : index
    %87 = memref.load %arg6[%c37_42] : memref<75xf32, #tpu.memory_space<smem>>
    %c38_43 = arith.constant 38 : index
    %88 = memref.load %arg6[%c38_43] : memref<75xf32, #tpu.memory_space<smem>>
    %c39_44 = arith.constant 39 : index
    %89 = memref.load %arg6[%c39_44] : memref<75xf32, #tpu.memory_space<smem>>
    %c40_45 = arith.constant 40 : index
    %90 = memref.load %arg6[%c40_45] : memref<75xf32, #tpu.memory_space<smem>>
    %c41_46 = arith.constant 41 : index
    %91 = memref.load %arg6[%c41_46] : memref<75xf32, #tpu.memory_space<smem>>
    %c42_47 = arith.constant 42 : index
    %92 = memref.load %arg6[%c42_47] : memref<75xf32, #tpu.memory_space<smem>>
    %c43_48 = arith.constant 43 : index
    %93 = memref.load %arg6[%c43_48] : memref<75xf32, #tpu.memory_space<smem>>
    %c44_49 = arith.constant 44 : index
    %94 = memref.load %arg6[%c44_49] : memref<75xf32, #tpu.memory_space<smem>>
    %c45 = arith.constant 45 : index
    %95 = memref.load %arg6[%c45] : memref<75xf32, #tpu.memory_space<smem>>
    %c46 = arith.constant 46 : index
    %96 = memref.load %arg6[%c46] : memref<75xf32, #tpu.memory_space<smem>>
    %c47 = arith.constant 47 : index
    %97 = memref.load %arg6[%c47] : memref<75xf32, #tpu.memory_space<smem>>
    %c48 = arith.constant 48 : index
    %98 = memref.load %arg6[%c48] : memref<75xf32, #tpu.memory_space<smem>>
    %c49 = arith.constant 49 : index
    %99 = memref.load %arg6[%c49] : memref<75xf32, #tpu.memory_space<smem>>
    %c50 = arith.constant 50 : index
    %100 = memref.load %arg6[%c50] : memref<75xf32, #tpu.memory_space<smem>>
    %c51 = arith.constant 51 : index
    %101 = memref.load %arg6[%c51] : memref<75xf32, #tpu.memory_space<smem>>
    %c52 = arith.constant 52 : index
    %102 = memref.load %arg6[%c52] : memref<75xf32, #tpu.memory_space<smem>>
    %c53 = arith.constant 53 : index
    %103 = memref.load %arg6[%c53] : memref<75xf32, #tpu.memory_space<smem>>
    %c54 = arith.constant 54 : index
    %104 = memref.load %arg6[%c54] : memref<75xf32, #tpu.memory_space<smem>>
    %c55 = arith.constant 55 : index
    %105 = memref.load %arg6[%c55] : memref<75xf32, #tpu.memory_space<smem>>
    %c56 = arith.constant 56 : index
    %106 = memref.load %arg6[%c56] : memref<75xf32, #tpu.memory_space<smem>>
    %c57 = arith.constant 57 : index
    %107 = memref.load %arg6[%c57] : memref<75xf32, #tpu.memory_space<smem>>
    %c58 = arith.constant 58 : index
    %108 = memref.load %arg6[%c58] : memref<75xf32, #tpu.memory_space<smem>>
    %c59 = arith.constant 59 : index
    %109 = memref.load %arg6[%c59] : memref<75xf32, #tpu.memory_space<smem>>
    %c60 = arith.constant 60 : index
    %110 = memref.load %arg6[%c60] : memref<75xf32, #tpu.memory_space<smem>>
    %c61 = arith.constant 61 : index
    %111 = memref.load %arg6[%c61] : memref<75xf32, #tpu.memory_space<smem>>
    %c62 = arith.constant 62 : index
    %112 = memref.load %arg6[%c62] : memref<75xf32, #tpu.memory_space<smem>>
    %c63 = arith.constant 63 : index
    %113 = memref.load %arg6[%c63] : memref<75xf32, #tpu.memory_space<smem>>
    %c64 = arith.constant 64 : index
    %114 = memref.load %arg6[%c64] : memref<75xf32, #tpu.memory_space<smem>>
    %c65 = arith.constant 65 : index
    %115 = memref.load %arg6[%c65] : memref<75xf32, #tpu.memory_space<smem>>
    %c66 = arith.constant 66 : index
    %116 = memref.load %arg6[%c66] : memref<75xf32, #tpu.memory_space<smem>>
    %c67 = arith.constant 67 : index
    %117 = memref.load %arg6[%c67] : memref<75xf32, #tpu.memory_space<smem>>
    %c68 = arith.constant 68 : index
    %118 = memref.load %arg6[%c68] : memref<75xf32, #tpu.memory_space<smem>>
    %c69 = arith.constant 69 : index
    %119 = memref.load %arg6[%c69] : memref<75xf32, #tpu.memory_space<smem>>
    %c70 = arith.constant 70 : index
    %120 = memref.load %arg6[%c70] : memref<75xf32, #tpu.memory_space<smem>>
    %c71 = arith.constant 71 : index
    %121 = memref.load %arg6[%c71] : memref<75xf32, #tpu.memory_space<smem>>
    %c72 = arith.constant 72 : index
    %122 = memref.load %arg6[%c72] : memref<75xf32, #tpu.memory_space<smem>>
    %c73 = arith.constant 73 : index
    %123 = memref.load %arg6[%c73] : memref<75xf32, #tpu.memory_space<smem>>
    %c74 = arith.constant 74 : index
    %124 = memref.load %arg6[%c74] : memref<75xf32, #tpu.memory_space<smem>>
    %c0_50 = arith.constant 0 : index
    %125 = memref.load %arg7[%c0_50] : memref<5xf32, #tpu.memory_space<smem>>
    %c1_51 = arith.constant 1 : index
    %126 = memref.load %arg7[%c1_51] : memref<5xf32, #tpu.memory_space<smem>>
    %c2_52 = arith.constant 2 : index
    %127 = memref.load %arg7[%c2_52] : memref<5xf32, #tpu.memory_space<smem>>
    %c3_53 = arith.constant 3 : index
    %128 = memref.load %arg7[%c3_53] : memref<5xf32, #tpu.memory_space<smem>>
    %c4_54 = arith.constant 4 : index
    %129 = memref.load %arg7[%c4_54] : memref<5xf32, #tpu.memory_space<smem>>
    %c0_55 = arith.constant 0 : index
    %130 = memref.load %arg8[%c0_55] : memref<15xf32, #tpu.memory_space<smem>>
    %c1_56 = arith.constant 1 : index
    %131 = memref.load %arg8[%c1_56] : memref<15xf32, #tpu.memory_space<smem>>
    %c2_57 = arith.constant 2 : index
    %132 = memref.load %arg8[%c2_57] : memref<15xf32, #tpu.memory_space<smem>>
    %c3_58 = arith.constant 3 : index
    %133 = memref.load %arg8[%c3_58] : memref<15xf32, #tpu.memory_space<smem>>
    %c4_59 = arith.constant 4 : index
    %134 = memref.load %arg8[%c4_59] : memref<15xf32, #tpu.memory_space<smem>>
    %c5_60 = arith.constant 5 : index
    %135 = memref.load %arg8[%c5_60] : memref<15xf32, #tpu.memory_space<smem>>
    %c6_61 = arith.constant 6 : index
    %136 = memref.load %arg8[%c6_61] : memref<15xf32, #tpu.memory_space<smem>>
    %c7_62 = arith.constant 7 : index
    %137 = memref.load %arg8[%c7_62] : memref<15xf32, #tpu.memory_space<smem>>
    %c8_63 = arith.constant 8 : index
    %138 = memref.load %arg8[%c8_63] : memref<15xf32, #tpu.memory_space<smem>>
    %c9_64 = arith.constant 9 : index
    %139 = memref.load %arg8[%c9_64] : memref<15xf32, #tpu.memory_space<smem>>
    %c10_65 = arith.constant 10 : index
    %140 = memref.load %arg8[%c10_65] : memref<15xf32, #tpu.memory_space<smem>>
    %c11_66 = arith.constant 11 : index
    %141 = memref.load %arg8[%c11_66] : memref<15xf32, #tpu.memory_space<smem>>
    %c12_67 = arith.constant 12 : index
    %142 = memref.load %arg8[%c12_67] : memref<15xf32, #tpu.memory_space<smem>>
    %c13_68 = arith.constant 13 : index
    %143 = memref.load %arg8[%c13_68] : memref<15xf32, #tpu.memory_space<smem>>
    %c14_69 = arith.constant 14 : index
    %144 = memref.load %arg8[%c14_69] : memref<15xf32, #tpu.memory_space<smem>>
    %c0_70 = arith.constant 0 : index
    %145 = memref.load %arg9[%c0_70] : memref<1xf32, #tpu.memory_space<smem>>
    %146 = tpu.iota {dimensions = array<i32: 1>} : vector<8x256xi32>
    %c128_i32 = arith.constant 128 : i32
    %147 = vector.broadcast %c128_i32 : i32 to vector<8x256xi32>
    %148 = arith.cmpi slt, %146, %147 : vector<8x256xi32>
    %c0_i32 = arith.constant 0 : i32
    %c8_i32 = arith.constant 8 : i32
    %149 = arith.muli %c0_i32, %c8_i32 : i32
    %150 = tpu.assume_multiple %149, 8 : i32
    %151 = arith.index_cast %150 : i32 to index
    %c0_71 = arith.constant 0 : index
    %152 = vector.load %arg1[%151, %c0_71] : memref<8x256xf32, #tpu.memory_space<vmem>>, vector<8x256xf32>
    %153 = arith.index_cast %150 : i32 to index
    %c0_72 = arith.constant 0 : index
    %154 = vector.load %arg2[%153, %c0_72] : memref<8x256xf32, #tpu.memory_space<vmem>>, vector<8x256xf32>
    %155 = arith.index_cast %150 : i32 to index
    %c0_73 = arith.constant 0 : index
    %156 = vector.load %arg3[%155, %c0_73] : memref<8x256xf32, #tpu.memory_space<vmem>>, vector<8x256xf32>
    %c1_i32 = arith.constant 1 : i32
    %157 = tpu.dynamic_rotate %152 by %c1_i32 dim 1 : vector<8x256xf32>, i32 -> vector<8x256xf32>
    %c255_i32 = arith.constant 255 : i32
    %158 = tpu.dynamic_rotate %152 by %c255_i32 dim 1 : vector<8x256xf32>, i32 -> vector<8x256xf32>
    %159 = vector.broadcast %0 : f32 to vector<8x256xf32>
    %160 = arith.mulf %159, %157 : vector<8x256xf32>
    %161 = vector.broadcast %1 : f32 to vector<8x256xf32>
    %162 = arith.mulf %161, %152 : vector<8x256xf32>
    %163 = arith.addf %160, %162 : vector<8x256xf32>
    %164 = vector.broadcast %2 : f32 to vector<8x256xf32>
    %165 = arith.mulf %164, %158 : vector<8x256xf32>
    %166 = arith.addf %163, %165 : vector<8x256xf32>
    %167 = vector.broadcast %45 : f32 to vector<8x256xf32>
    %168 = arith.addf %167, %166 : vector<8x256xf32>
    %169 = vector.broadcast %9 : f32 to vector<8x256xf32>
    %170 = arith.mulf %169, %157 : vector<8x256xf32>
    %171 = vector.broadcast %10 : f32 to vector<8x256xf32>
    %172 = arith.mulf %171, %152 : vector<8x256xf32>
    %173 = arith.addf %170, %172 : vector<8x256xf32>
    %174 = vector.broadcast %11 : f32 to vector<8x256xf32>
    %175 = arith.mulf %174, %158 : vector<8x256xf32>
    %176 = arith.addf %173, %175 : vector<8x256xf32>
    %177 = vector.broadcast %46 : f32 to vector<8x256xf32>
    %178 = arith.addf %177, %176 : vector<8x256xf32>
    %179 = vector.broadcast %18 : f32 to vector<8x256xf32>
    %180 = arith.mulf %179, %157 : vector<8x256xf32>
    %181 = vector.broadcast %19 : f32 to vector<8x256xf32>
    %182 = arith.mulf %181, %152 : vector<8x256xf32>
    %183 = arith.addf %180, %182 : vector<8x256xf32>
    %184 = vector.broadcast %20 : f32 to vector<8x256xf32>
    %185 = arith.mulf %184, %158 : vector<8x256xf32>
    %186 = arith.addf %183, %185 : vector<8x256xf32>
    %187 = vector.broadcast %47 : f32 to vector<8x256xf32>
    %188 = arith.addf %187, %186 : vector<8x256xf32>
    %189 = vector.broadcast %27 : f32 to vector<8x256xf32>
    %190 = arith.mulf %189, %157 : vector<8x256xf32>
    %191 = vector.broadcast %28 : f32 to vector<8x256xf32>
    %192 = arith.mulf %191, %152 : vector<8x256xf32>
    %193 = arith.addf %190, %192 : vector<8x256xf32>
    %194 = vector.broadcast %29 : f32 to vector<8x256xf32>
    %195 = arith.mulf %194, %158 : vector<8x256xf32>
    %196 = arith.addf %193, %195 : vector<8x256xf32>
    %197 = vector.broadcast %48 : f32 to vector<8x256xf32>
    %198 = arith.addf %197, %196 : vector<8x256xf32>
    %199 = vector.broadcast %36 : f32 to vector<8x256xf32>
    %200 = arith.mulf %199, %157 : vector<8x256xf32>
    %201 = vector.broadcast %37 : f32 to vector<8x256xf32>
    %202 = arith.mulf %201, %152 : vector<8x256xf32>
    %203 = arith.addf %200, %202 : vector<8x256xf32>
    %204 = vector.broadcast %38 : f32 to vector<8x256xf32>
    %205 = arith.mulf %204, %158 : vector<8x256xf32>
    %206 = arith.addf %203, %205 : vector<8x256xf32>
    %207 = vector.broadcast %49 : f32 to vector<8x256xf32>
    %208 = arith.addf %207, %206 : vector<8x256xf32>
    %c1_i32_74 = arith.constant 1 : i32
    %209 = tpu.dynamic_rotate %154 by %c1_i32_74 dim 1 : vector<8x256xf32>, i32 -> vector<8x256xf32>
    %c255_i32_75 = arith.constant 255 : i32
    %210 = tpu.dynamic_rotate %154 by %c255_i32_75 dim 1 : vector<8x256xf32>, i32 -> vector<8x256xf32>
    %211 = vector.broadcast %3 : f32 to vector<8x256xf32>
    %212 = arith.mulf %211, %209 : vector<8x256xf32>
    %213 = vector.broadcast %4 : f32 to vector<8x256xf32>
    %214 = arith.mulf %213, %154 : vector<8x256xf32>
    %215 = arith.addf %212, %214 : vector<8x256xf32>
    %216 = vector.broadcast %5 : f32 to vector<8x256xf32>
    %217 = arith.mulf %216, %210 : vector<8x256xf32>
    %218 = arith.addf %215, %217 : vector<8x256xf32>
    %219 = arith.addf %168, %218 : vector<8x256xf32>
    %220 = vector.broadcast %12 : f32 to vector<8x256xf32>
    %221 = arith.mulf %220, %209 : vector<8x256xf32>
    %222 = vector.broadcast %13 : f32 to vector<8x256xf32>
    %223 = arith.mulf %222, %154 : vector<8x256xf32>
    %224 = arith.addf %221, %223 : vector<8x256xf32>
    %225 = vector.broadcast %14 : f32 to vector<8x256xf32>
    %226 = arith.mulf %225, %210 : vector<8x256xf32>
    %227 = arith.addf %224, %226 : vector<8x256xf32>
    %228 = arith.addf %178, %227 : vector<8x256xf32>
    %229 = vector.broadcast %21 : f32 to vector<8x256xf32>
    %230 = arith.mulf %229, %209 : vector<8x256xf32>
    %231 = vector.broadcast %22 : f32 to vector<8x256xf32>
    %232 = arith.mulf %231, %154 : vector<8x256xf32>
    %233 = arith.addf %230, %232 : vector<8x256xf32>
    %234 = vector.broadcast %23 : f32 to vector<8x256xf32>
    %235 = arith.mulf %234, %210 : vector<8x256xf32>
    %236 = arith.addf %233, %235 : vector<8x256xf32>
    %237 = arith.addf %188, %236 : vector<8x256xf32>
    %238 = vector.broadcast %30 : f32 to vector<8x256xf32>
    %239 = arith.mulf %238, %209 : vector<8x256xf32>
    %240 = vector.broadcast %31 : f32 to vector<8x256xf32>
    %241 = arith.mulf %240, %154 : vector<8x256xf32>
    %242 = arith.addf %239, %241 : vector<8x256xf32>
    %243 = vector.broadcast %32 : f32 to vector<8x256xf32>
    %244 = arith.mulf %243, %210 : vector<8x256xf32>
    %245 = arith.addf %242, %244 : vector<8x256xf32>
    %246 = arith.addf %198, %245 : vector<8x256xf32>
    %247 = vector.broadcast %39 : f32 to vector<8x256xf32>
    %248 = arith.mulf %247, %209 : vector<8x256xf32>
    %249 = vector.broadcast %40 : f32 to vector<8x256xf32>
    %250 = arith.mulf %249, %154 : vector<8x256xf32>
    %251 = arith.addf %248, %250 : vector<8x256xf32>
    %252 = vector.broadcast %41 : f32 to vector<8x256xf32>
    %253 = arith.mulf %252, %210 : vector<8x256xf32>
    %254 = arith.addf %251, %253 : vector<8x256xf32>
    %255 = arith.addf %208, %254 : vector<8x256xf32>
    %c1_i32_76 = arith.constant 1 : i32
    %256 = tpu.dynamic_rotate %156 by %c1_i32_76 dim 1 : vector<8x256xf32>, i32 -> vector<8x256xf32>
    %c255_i32_77 = arith.constant 255 : i32
    %257 = tpu.dynamic_rotate %156 by %c255_i32_77 dim 1 : vector<8x256xf32>, i32 -> vector<8x256xf32>
    %258 = vector.broadcast %6 : f32 to vector<8x256xf32>
    %259 = arith.mulf %258, %256 : vector<8x256xf32>
    %260 = vector.broadcast %7 : f32 to vector<8x256xf32>
    %261 = arith.mulf %260, %156 : vector<8x256xf32>
    %262 = arith.addf %259, %261 : vector<8x256xf32>
    %263 = vector.broadcast %8 : f32 to vector<8x256xf32>
    %264 = arith.mulf %263, %257 : vector<8x256xf32>
    %265 = arith.addf %262, %264 : vector<8x256xf32>
    %266 = arith.addf %219, %265 : vector<8x256xf32>
    %267 = vector.broadcast %15 : f32 to vector<8x256xf32>
    %268 = arith.mulf %267, %256 : vector<8x256xf32>
    %269 = vector.broadcast %16 : f32 to vector<8x256xf32>
    %270 = arith.mulf %269, %156 : vector<8x256xf32>
    %271 = arith.addf %268, %270 : vector<8x256xf32>
    %272 = vector.broadcast %17 : f32 to vector<8x256xf32>
    %273 = arith.mulf %272, %257 : vector<8x256xf32>
    %274 = arith.addf %271, %273 : vector<8x256xf32>
    %275 = arith.addf %228, %274 : vector<8x256xf32>
    %276 = vector.broadcast %24 : f32 to vector<8x256xf32>
    %277 = arith.mulf %276, %256 : vector<8x256xf32>
    %278 = vector.broadcast %25 : f32 to vector<8x256xf32>
    %279 = arith.mulf %278, %156 : vector<8x256xf32>
    %280 = arith.addf %277, %279 : vector<8x256xf32>
    %281 = vector.broadcast %26 : f32 to vector<8x256xf32>
    %282 = arith.mulf %281, %257 : vector<8x256xf32>
    %283 = arith.addf %280, %282 : vector<8x256xf32>
    %284 = arith.addf %237, %283 : vector<8x256xf32>
    %285 = vector.broadcast %33 : f32 to vector<8x256xf32>
    %286 = arith.mulf %285, %256 : vector<8x256xf32>
    %287 = vector.broadcast %34 : f32 to vector<8x256xf32>
    %288 = arith.mulf %287, %156 : vector<8x256xf32>
    %289 = arith.addf %286, %288 : vector<8x256xf32>
    %290 = vector.broadcast %35 : f32 to vector<8x256xf32>
    %291 = arith.mulf %290, %257 : vector<8x256xf32>
    %292 = arith.addf %289, %291 : vector<8x256xf32>
    %293 = arith.addf %246, %292 : vector<8x256xf32>
    %294 = vector.broadcast %42 : f32 to vector<8x256xf32>
    %295 = arith.mulf %294, %256 : vector<8x256xf32>
    %296 = vector.broadcast %43 : f32 to vector<8x256xf32>
    %297 = arith.mulf %296, %156 : vector<8x256xf32>
    %298 = arith.addf %295, %297 : vector<8x256xf32>
    %299 = vector.broadcast %44 : f32 to vector<8x256xf32>
    %300 = arith.mulf %299, %257 : vector<8x256xf32>
    %301 = arith.addf %298, %300 : vector<8x256xf32>
    %302 = arith.addf %255, %301 : vector<8x256xf32>
    %cst = arith.constant 0.000000e+00 : f32
    %303 = vector.broadcast %cst : f32 to vector<8x256xf32>
    %304 = arith.maximumf %266, %303 : vector<8x256xf32>
    %cst_78 = arith.constant 0.000000e+00 : f32
    %305 = vector.broadcast %cst_78 : f32 to vector<8x256xf32>
    %306 = arith.select %148, %304, %305 : vector<8x256xi1>, vector<8x256xf32>
    %cst_79 = arith.constant 0.000000e+00 : f32
    %307 = vector.broadcast %cst_79 : f32 to vector<8x256xf32>
    %308 = arith.maximumf %275, %307 : vector<8x256xf32>
    %cst_80 = arith.constant 0.000000e+00 : f32
    %309 = vector.broadcast %cst_80 : f32 to vector<8x256xf32>
    %310 = arith.select %148, %308, %309 : vector<8x256xi1>, vector<8x256xf32>
    %cst_81 = arith.constant 0.000000e+00 : f32
    %311 = vector.broadcast %cst_81 : f32 to vector<8x256xf32>
    %312 = arith.maximumf %284, %311 : vector<8x256xf32>
    %cst_82 = arith.constant 0.000000e+00 : f32
    %313 = vector.broadcast %cst_82 : f32 to vector<8x256xf32>
    %314 = arith.select %148, %312, %313 : vector<8x256xi1>, vector<8x256xf32>
    %cst_83 = arith.constant 0.000000e+00 : f32
    %315 = vector.broadcast %cst_83 : f32 to vector<8x256xf32>
    %316 = arith.maximumf %293, %315 : vector<8x256xf32>
    %cst_84 = arith.constant 0.000000e+00 : f32
    %317 = vector.broadcast %cst_84 : f32 to vector<8x256xf32>
    %318 = arith.select %148, %316, %317 : vector<8x256xi1>, vector<8x256xf32>
    %cst_85 = arith.constant 0.000000e+00 : f32
    %319 = vector.broadcast %cst_85 : f32 to vector<8x256xf32>
    %320 = arith.maximumf %302, %319 : vector<8x256xf32>
    %cst_86 = arith.constant 0.000000e+00 : f32
    %321 = vector.broadcast %cst_86 : f32 to vector<8x256xf32>
    %322 = arith.select %148, %320, %321 : vector<8x256xi1>, vector<8x256xf32>
    %c1_i32_87 = arith.constant 1 : i32
    %323 = tpu.dynamic_rotate %306 by %c1_i32_87 dim 1 : vector<8x256xf32>, i32 -> vector<8x256xf32>
    %c255_i32_88 = arith.constant 255 : i32
    %324 = tpu.dynamic_rotate %306 by %c255_i32_88 dim 1 : vector<8x256xf32>, i32 -> vector<8x256xf32>
    %325 = vector.broadcast %50 : f32 to vector<8x256xf32>
    %326 = arith.mulf %325, %323 : vector<8x256xf32>
    %327 = vector.broadcast %51 : f32 to vector<8x256xf32>
    %328 = arith.mulf %327, %306 : vector<8x256xf32>
    %329 = arith.addf %326, %328 : vector<8x256xf32>
    %330 = vector.broadcast %52 : f32 to vector<8x256xf32>
    %331 = arith.mulf %330, %324 : vector<8x256xf32>
    %332 = arith.addf %329, %331 : vector<8x256xf32>
    %333 = vector.broadcast %125 : f32 to vector<8x256xf32>
    %334 = arith.addf %333, %332 : vector<8x256xf32>
    %335 = vector.broadcast %65 : f32 to vector<8x256xf32>
    %336 = arith.mulf %335, %323 : vector<8x256xf32>
    %337 = vector.broadcast %66 : f32 to vector<8x256xf32>
    %338 = arith.mulf %337, %306 : vector<8x256xf32>
    %339 = arith.addf %336, %338 : vector<8x256xf32>
    %340 = vector.broadcast %67 : f32 to vector<8x256xf32>
    %341 = arith.mulf %340, %324 : vector<8x256xf32>
    %342 = arith.addf %339, %341 : vector<8x256xf32>
    %343 = vector.broadcast %126 : f32 to vector<8x256xf32>
    %344 = arith.addf %343, %342 : vector<8x256xf32>
    %345 = vector.broadcast %80 : f32 to vector<8x256xf32>
    %346 = arith.mulf %345, %323 : vector<8x256xf32>
    %347 = vector.broadcast %81 : f32 to vector<8x256xf32>
    %348 = arith.mulf %347, %306 : vector<8x256xf32>
    %349 = arith.addf %346, %348 : vector<8x256xf32>
    %350 = vector.broadcast %82 : f32 to vector<8x256xf32>
    %351 = arith.mulf %350, %324 : vector<8x256xf32>
    %352 = arith.addf %349, %351 : vector<8x256xf32>
    %353 = vector.broadcast %127 : f32 to vector<8x256xf32>
    %354 = arith.addf %353, %352 : vector<8x256xf32>
    %355 = vector.broadcast %95 : f32 to vector<8x256xf32>
    %356 = arith.mulf %355, %323 : vector<8x256xf32>
    %357 = vector.broadcast %96 : f32 to vector<8x256xf32>
    %358 = arith.mulf %357, %306 : vector<8x256xf32>
    %359 = arith.addf %356, %358 : vector<8x256xf32>
    %360 = vector.broadcast %97 : f32 to vector<8x256xf32>
    %361 = arith.mulf %360, %324 : vector<8x256xf32>
    %362 = arith.addf %359, %361 : vector<8x256xf32>
    %363 = vector.broadcast %128 : f32 to vector<8x256xf32>
    %364 = arith.addf %363, %362 : vector<8x256xf32>
    %365 = vector.broadcast %110 : f32 to vector<8x256xf32>
    %366 = arith.mulf %365, %323 : vector<8x256xf32>
    %367 = vector.broadcast %111 : f32 to vector<8x256xf32>
    %368 = arith.mulf %367, %306 : vector<8x256xf32>
    %369 = arith.addf %366, %368 : vector<8x256xf32>
    %370 = vector.broadcast %112 : f32 to vector<8x256xf32>
    %371 = arith.mulf %370, %324 : vector<8x256xf32>
    %372 = arith.addf %369, %371 : vector<8x256xf32>
    %373 = vector.broadcast %129 : f32 to vector<8x256xf32>
    %374 = arith.addf %373, %372 : vector<8x256xf32>
    %c1_i32_89 = arith.constant 1 : i32
    %375 = tpu.dynamic_rotate %310 by %c1_i32_89 dim 1 : vector<8x256xf32>, i32 -> vector<8x256xf32>
    %c255_i32_90 = arith.constant 255 : i32
    %376 = tpu.dynamic_rotate %310 by %c255_i32_90 dim 1 : vector<8x256xf32>, i32 -> vector<8x256xf32>
    %377 = vector.broadcast %53 : f32 to vector<8x256xf32>
    %378 = arith.mulf %377, %375 : vector<8x256xf32>
    %379 = vector.broadcast %54 : f32 to vector<8x256xf32>
    %380 = arith.mulf %379, %310 : vector<8x256xf32>
    %381 = arith.addf %378, %380 : vector<8x256xf32>
    %382 = vector.broadcast %55 : f32 to vector<8x256xf32>
    %383 = arith.mulf %382, %376 : vector<8x256xf32>
    %384 = arith.addf %381, %383 : vector<8x256xf32>
    %385 = arith.addf %334, %384 : vector<8x256xf32>
    %386 = vector.broadcast %68 : f32 to vector<8x256xf32>
    %387 = arith.mulf %386, %375 : vector<8x256xf32>
    %388 = vector.broadcast %69 : f32 to vector<8x256xf32>
    %389 = arith.mulf %388, %310 : vector<8x256xf32>
    %390 = arith.addf %387, %389 : vector<8x256xf32>
    %391 = vector.broadcast %70 : f32 to vector<8x256xf32>
    %392 = arith.mulf %391, %376 : vector<8x256xf32>
    %393 = arith.addf %390, %392 : vector<8x256xf32>
    %394 = arith.addf %344, %393 : vector<8x256xf32>
    %395 = vector.broadcast %83 : f32 to vector<8x256xf32>
    %396 = arith.mulf %395, %375 : vector<8x256xf32>
    %397 = vector.broadcast %84 : f32 to vector<8x256xf32>
    %398 = arith.mulf %397, %310 : vector<8x256xf32>
    %399 = arith.addf %396, %398 : vector<8x256xf32>
    %400 = vector.broadcast %85 : f32 to vector<8x256xf32>
    %401 = arith.mulf %400, %376 : vector<8x256xf32>
    %402 = arith.addf %399, %401 : vector<8x256xf32>
    %403 = arith.addf %354, %402 : vector<8x256xf32>
    %404 = vector.broadcast %98 : f32 to vector<8x256xf32>
    %405 = arith.mulf %404, %375 : vector<8x256xf32>
    %406 = vector.broadcast %99 : f32 to vector<8x256xf32>
    %407 = arith.mulf %406, %310 : vector<8x256xf32>
    %408 = arith.addf %405, %407 : vector<8x256xf32>
    %409 = vector.broadcast %100 : f32 to vector<8x256xf32>
    %410 = arith.mulf %409, %376 : vector<8x256xf32>
    %411 = arith.addf %408, %410 : vector<8x256xf32>
    %412 = arith.addf %364, %411 : vector<8x256xf32>
    %413 = vector.broadcast %113 : f32 to vector<8x256xf32>
    %414 = arith.mulf %413, %375 : vector<8x256xf32>
    %415 = vector.broadcast %114 : f32 to vector<8x256xf32>
    %416 = arith.mulf %415, %310 : vector<8x256xf32>
    %417 = arith.addf %414, %416 : vector<8x256xf32>
    %418 = vector.broadcast %115 : f32 to vector<8x256xf32>
    %419 = arith.mulf %418, %376 : vector<8x256xf32>
    %420 = arith.addf %417, %419 : vector<8x256xf32>
    %421 = arith.addf %374, %420 : vector<8x256xf32>
    %c1_i32_91 = arith.constant 1 : i32
    %422 = tpu.dynamic_rotate %314 by %c1_i32_91 dim 1 : vector<8x256xf32>, i32 -> vector<8x256xf32>
    %c255_i32_92 = arith.constant 255 : i32
    %423 = tpu.dynamic_rotate %314 by %c255_i32_92 dim 1 : vector<8x256xf32>, i32 -> vector<8x256xf32>
    %424 = vector.broadcast %56 : f32 to vector<8x256xf32>
    %425 = arith.mulf %424, %422 : vector<8x256xf32>
    %426 = vector.broadcast %57 : f32 to vector<8x256xf32>
    %427 = arith.mulf %426, %314 : vector<8x256xf32>
    %428 = arith.addf %425, %427 : vector<8x256xf32>
    %429 = vector.broadcast %58 : f32 to vector<8x256xf32>
    %430 = arith.mulf %429, %423 : vector<8x256xf32>
    %431 = arith.addf %428, %430 : vector<8x256xf32>
    %432 = arith.addf %385, %431 : vector<8x256xf32>
    %433 = vector.broadcast %71 : f32 to vector<8x256xf32>
    %434 = arith.mulf %433, %422 : vector<8x256xf32>
    %435 = vector.broadcast %72 : f32 to vector<8x256xf32>
    %436 = arith.mulf %435, %314 : vector<8x256xf32>
    %437 = arith.addf %434, %436 : vector<8x256xf32>
    %438 = vector.broadcast %73 : f32 to vector<8x256xf32>
    %439 = arith.mulf %438, %423 : vector<8x256xf32>
    %440 = arith.addf %437, %439 : vector<8x256xf32>
    %441 = arith.addf %394, %440 : vector<8x256xf32>
    %442 = vector.broadcast %86 : f32 to vector<8x256xf32>
    %443 = arith.mulf %442, %422 : vector<8x256xf32>
    %444 = vector.broadcast %87 : f32 to vector<8x256xf32>
    %445 = arith.mulf %444, %314 : vector<8x256xf32>
    %446 = arith.addf %443, %445 : vector<8x256xf32>
    %447 = vector.broadcast %88 : f32 to vector<8x256xf32>
    %448 = arith.mulf %447, %423 : vector<8x256xf32>
    %449 = arith.addf %446, %448 : vector<8x256xf32>
    %450 = arith.addf %403, %449 : vector<8x256xf32>
    %451 = vector.broadcast %101 : f32 to vector<8x256xf32>
    %452 = arith.mulf %451, %422 : vector<8x256xf32>
    %453 = vector.broadcast %102 : f32 to vector<8x256xf32>
    %454 = arith.mulf %453, %314 : vector<8x256xf32>
    %455 = arith.addf %452, %454 : vector<8x256xf32>
    %456 = vector.broadcast %103 : f32 to vector<8x256xf32>
    %457 = arith.mulf %456, %423 : vector<8x256xf32>
    %458 = arith.addf %455, %457 : vector<8x256xf32>
    %459 = arith.addf %412, %458 : vector<8x256xf32>
    %460 = vector.broadcast %116 : f32 to vector<8x256xf32>
    %461 = arith.mulf %460, %422 : vector<8x256xf32>
    %462 = vector.broadcast %117 : f32 to vector<8x256xf32>
    %463 = arith.mulf %462, %314 : vector<8x256xf32>
    %464 = arith.addf %461, %463 : vector<8x256xf32>
    %465 = vector.broadcast %118 : f32 to vector<8x256xf32>
    %466 = arith.mulf %465, %423 : vector<8x256xf32>
    %467 = arith.addf %464, %466 : vector<8x256xf32>
    %468 = arith.addf %421, %467 : vector<8x256xf32>
    %c1_i32_93 = arith.constant 1 : i32
    %469 = tpu.dynamic_rotate %318 by %c1_i32_93 dim 1 : vector<8x256xf32>, i32 -> vector<8x256xf32>
    %c255_i32_94 = arith.constant 255 : i32
    %470 = tpu.dynamic_rotate %318 by %c255_i32_94 dim 1 : vector<8x256xf32>, i32 -> vector<8x256xf32>
    %471 = vector.broadcast %59 : f32 to vector<8x256xf32>
    %472 = arith.mulf %471, %469 : vector<8x256xf32>
    %473 = vector.broadcast %60 : f32 to vector<8x256xf32>
    %474 = arith.mulf %473, %318 : vector<8x256xf32>
    %475 = arith.addf %472, %474 : vector<8x256xf32>
    %476 = vector.broadcast %61 : f32 to vector<8x256xf32>
    %477 = arith.mulf %476, %470 : vector<8x256xf32>
    %478 = arith.addf %475, %477 : vector<8x256xf32>
    %479 = arith.addf %432, %478 : vector<8x256xf32>
    %480 = vector.broadcast %74 : f32 to vector<8x256xf32>
    %481 = arith.mulf %480, %469 : vector<8x256xf32>
    %482 = vector.broadcast %75 : f32 to vector<8x256xf32>
    %483 = arith.mulf %482, %318 : vector<8x256xf32>
    %484 = arith.addf %481, %483 : vector<8x256xf32>
    %485 = vector.broadcast %76 : f32 to vector<8x256xf32>
    %486 = arith.mulf %485, %470 : vector<8x256xf32>
    %487 = arith.addf %484, %486 : vector<8x256xf32>
    %488 = arith.addf %441, %487 : vector<8x256xf32>
    %489 = vector.broadcast %89 : f32 to vector<8x256xf32>
    %490 = arith.mulf %489, %469 : vector<8x256xf32>
    %491 = vector.broadcast %90 : f32 to vector<8x256xf32>
    %492 = arith.mulf %491, %318 : vector<8x256xf32>
    %493 = arith.addf %490, %492 : vector<8x256xf32>
    %494 = vector.broadcast %91 : f32 to vector<8x256xf32>
    %495 = arith.mulf %494, %470 : vector<8x256xf32>
    %496 = arith.addf %493, %495 : vector<8x256xf32>
    %497 = arith.addf %450, %496 : vector<8x256xf32>
    %498 = vector.broadcast %104 : f32 to vector<8x256xf32>
    %499 = arith.mulf %498, %469 : vector<8x256xf32>
    %500 = vector.broadcast %105 : f32 to vector<8x256xf32>
    %501 = arith.mulf %500, %318 : vector<8x256xf32>
    %502 = arith.addf %499, %501 : vector<8x256xf32>
    %503 = vector.broadcast %106 : f32 to vector<8x256xf32>
    %504 = arith.mulf %503, %470 : vector<8x256xf32>
    %505 = arith.addf %502, %504 : vector<8x256xf32>
    %506 = arith.addf %459, %505 : vector<8x256xf32>
    %507 = vector.broadcast %119 : f32 to vector<8x256xf32>
    %508 = arith.mulf %507, %469 : vector<8x256xf32>
    %509 = vector.broadcast %120 : f32 to vector<8x256xf32>
    %510 = arith.mulf %509, %318 : vector<8x256xf32>
    %511 = arith.addf %508, %510 : vector<8x256xf32>
    %512 = vector.broadcast %121 : f32 to vector<8x256xf32>
    %513 = arith.mulf %512, %470 : vector<8x256xf32>
    %514 = arith.addf %511, %513 : vector<8x256xf32>
    %515 = arith.addf %468, %514 : vector<8x256xf32>
    %c1_i32_95 = arith.constant 1 : i32
    %516 = tpu.dynamic_rotate %322 by %c1_i32_95 dim 1 : vector<8x256xf32>, i32 -> vector<8x256xf32>
    %c255_i32_96 = arith.constant 255 : i32
    %517 = tpu.dynamic_rotate %322 by %c255_i32_96 dim 1 : vector<8x256xf32>, i32 -> vector<8x256xf32>
    %518 = vector.broadcast %62 : f32 to vector<8x256xf32>
    %519 = arith.mulf %518, %516 : vector<8x256xf32>
    %520 = vector.broadcast %63 : f32 to vector<8x256xf32>
    %521 = arith.mulf %520, %322 : vector<8x256xf32>
    %522 = arith.addf %519, %521 : vector<8x256xf32>
    %523 = vector.broadcast %64 : f32 to vector<8x256xf32>
    %524 = arith.mulf %523, %517 : vector<8x256xf32>
    %525 = arith.addf %522, %524 : vector<8x256xf32>
    %526 = arith.addf %479, %525 : vector<8x256xf32>
    %527 = vector.broadcast %77 : f32 to vector<8x256xf32>
    %528 = arith.mulf %527, %516 : vector<8x256xf32>
    %529 = vector.broadcast %78 : f32 to vector<8x256xf32>
    %530 = arith.mulf %529, %322 : vector<8x256xf32>
    %531 = arith.addf %528, %530 : vector<8x256xf32>
    %532 = vector.broadcast %79 : f32 to vector<8x256xf32>
    %533 = arith.mulf %532, %517 : vector<8x256xf32>
    %534 = arith.addf %531, %533 : vector<8x256xf32>
    %535 = arith.addf %488, %534 : vector<8x256xf32>
    %536 = vector.broadcast %92 : f32 to vector<8x256xf32>
    %537 = arith.mulf %536, %516 : vector<8x256xf32>
    %538 = vector.broadcast %93 : f32 to vector<8x256xf32>
    %539 = arith.mulf %538, %322 : vector<8x256xf32>
    %540 = arith.addf %537, %539 : vector<8x256xf32>
    %541 = vector.broadcast %94 : f32 to vector<8x256xf32>
    %542 = arith.mulf %541, %517 : vector<8x256xf32>
    %543 = arith.addf %540, %542 : vector<8x256xf32>
    %544 = arith.addf %497, %543 : vector<8x256xf32>
    %545 = vector.broadcast %107 : f32 to vector<8x256xf32>
    %546 = arith.mulf %545, %516 : vector<8x256xf32>
    %547 = vector.broadcast %108 : f32 to vector<8x256xf32>
    %548 = arith.mulf %547, %322 : vector<8x256xf32>
    %549 = arith.addf %546, %548 : vector<8x256xf32>
    %550 = vector.broadcast %109 : f32 to vector<8x256xf32>
    %551 = arith.mulf %550, %517 : vector<8x256xf32>
    %552 = arith.addf %549, %551 : vector<8x256xf32>
    %553 = arith.addf %506, %552 : vector<8x256xf32>
    %554 = vector.broadcast %122 : f32 to vector<8x256xf32>
    %555 = arith.mulf %554, %516 : vector<8x256xf32>
    %556 = vector.broadcast %123 : f32 to vector<8x256xf32>
    %557 = arith.mulf %556, %322 : vector<8x256xf32>
    %558 = arith.addf %555, %557 : vector<8x256xf32>
    %559 = vector.broadcast %124 : f32 to vector<8x256xf32>
    %560 = arith.mulf %559, %517 : vector<8x256xf32>
    %561 = arith.addf %558, %560 : vector<8x256xf32>
    %562 = arith.addf %515, %561 : vector<8x256xf32>
    %cst_97 = arith.constant 0.000000e+00 : f32
    %563 = vector.broadcast %cst_97 : f32 to vector<8x256xf32>
    %564 = arith.maximumf %526, %563 : vector<8x256xf32>
    %cst_98 = arith.constant 0.000000e+00 : f32
    %565 = vector.broadcast %cst_98 : f32 to vector<8x256xf32>
    %566 = arith.select %148, %564, %565 : vector<8x256xi1>, vector<8x256xf32>
    %cst_99 = arith.constant 0.000000e+00 : f32
    %567 = vector.broadcast %cst_99 : f32 to vector<8x256xf32>
    %568 = arith.maximumf %535, %567 : vector<8x256xf32>
    %cst_100 = arith.constant 0.000000e+00 : f32
    %569 = vector.broadcast %cst_100 : f32 to vector<8x256xf32>
    %570 = arith.select %148, %568, %569 : vector<8x256xi1>, vector<8x256xf32>
    %cst_101 = arith.constant 0.000000e+00 : f32
    %571 = vector.broadcast %cst_101 : f32 to vector<8x256xf32>
    %572 = arith.maximumf %544, %571 : vector<8x256xf32>
    %cst_102 = arith.constant 0.000000e+00 : f32
    %573 = vector.broadcast %cst_102 : f32 to vector<8x256xf32>
    %574 = arith.select %148, %572, %573 : vector<8x256xi1>, vector<8x256xf32>
    %cst_103 = arith.constant 0.000000e+00 : f32
    %575 = vector.broadcast %cst_103 : f32 to vector<8x256xf32>
    %576 = arith.maximumf %553, %575 : vector<8x256xf32>
    %cst_104 = arith.constant 0.000000e+00 : f32
    %577 = vector.broadcast %cst_104 : f32 to vector<8x256xf32>
    %578 = arith.select %148, %576, %577 : vector<8x256xi1>, vector<8x256xf32>
    %cst_105 = arith.constant 0.000000e+00 : f32
    %579 = vector.broadcast %cst_105 : f32 to vector<8x256xf32>
    %580 = arith.maximumf %562, %579 : vector<8x256xf32>
    %cst_106 = arith.constant 0.000000e+00 : f32
    %581 = vector.broadcast %cst_106 : f32 to vector<8x256xf32>
    %582 = arith.select %148, %580, %581 : vector<8x256xi1>, vector<8x256xf32>
    %c1_i32_107 = arith.constant 1 : i32
    %583 = tpu.dynamic_rotate %566 by %c1_i32_107 dim 1 : vector<8x256xf32>, i32 -> vector<8x256xf32>
    %c255_i32_108 = arith.constant 255 : i32
    %584 = tpu.dynamic_rotate %566 by %c255_i32_108 dim 1 : vector<8x256xf32>, i32 -> vector<8x256xf32>
    %585 = vector.broadcast %130 : f32 to vector<8x256xf32>
    %586 = arith.mulf %585, %583 : vector<8x256xf32>
    %587 = vector.broadcast %131 : f32 to vector<8x256xf32>
    %588 = arith.mulf %587, %566 : vector<8x256xf32>
    %589 = arith.addf %586, %588 : vector<8x256xf32>
    %590 = vector.broadcast %132 : f32 to vector<8x256xf32>
    %591 = arith.mulf %590, %584 : vector<8x256xf32>
    %592 = arith.addf %589, %591 : vector<8x256xf32>
    %593 = vector.broadcast %145 : f32 to vector<8x256xf32>
    %594 = arith.addf %593, %592 : vector<8x256xf32>
    %c1_i32_109 = arith.constant 1 : i32
    %595 = tpu.dynamic_rotate %570 by %c1_i32_109 dim 1 : vector<8x256xf32>, i32 -> vector<8x256xf32>
    %c255_i32_110 = arith.constant 255 : i32
    %596 = tpu.dynamic_rotate %570 by %c255_i32_110 dim 1 : vector<8x256xf32>, i32 -> vector<8x256xf32>
    %597 = vector.broadcast %133 : f32 to vector<8x256xf32>
    %598 = arith.mulf %597, %595 : vector<8x256xf32>
    %599 = vector.broadcast %134 : f32 to vector<8x256xf32>
    %600 = arith.mulf %599, %570 : vector<8x256xf32>
    %601 = arith.addf %598, %600 : vector<8x256xf32>
    %602 = vector.broadcast %135 : f32 to vector<8x256xf32>
    %603 = arith.mulf %602, %596 : vector<8x256xf32>
    %604 = arith.addf %601, %603 : vector<8x256xf32>
    %605 = arith.addf %594, %604 : vector<8x256xf32>
    %c1_i32_111 = arith.constant 1 : i32
    %606 = tpu.dynamic_rotate %574 by %c1_i32_111 dim 1 : vector<8x256xf32>, i32 -> vector<8x256xf32>
    %c255_i32_112 = arith.constant 255 : i32
    %607 = tpu.dynamic_rotate %574 by %c255_i32_112 dim 1 : vector<8x256xf32>, i32 -> vector<8x256xf32>
    %608 = vector.broadcast %136 : f32 to vector<8x256xf32>
    %609 = arith.mulf %608, %606 : vector<8x256xf32>
    %610 = vector.broadcast %137 : f32 to vector<8x256xf32>
    %611 = arith.mulf %610, %574 : vector<8x256xf32>
    %612 = arith.addf %609, %611 : vector<8x256xf32>
    %613 = vector.broadcast %138 : f32 to vector<8x256xf32>
    %614 = arith.mulf %613, %607 : vector<8x256xf32>
    %615 = arith.addf %612, %614 : vector<8x256xf32>
    %616 = arith.addf %605, %615 : vector<8x256xf32>
    %c1_i32_113 = arith.constant 1 : i32
    %617 = tpu.dynamic_rotate %578 by %c1_i32_113 dim 1 : vector<8x256xf32>, i32 -> vector<8x256xf32>
    %c255_i32_114 = arith.constant 255 : i32
    %618 = tpu.dynamic_rotate %578 by %c255_i32_114 dim 1 : vector<8x256xf32>, i32 -> vector<8x256xf32>
    %619 = vector.broadcast %139 : f32 to vector<8x256xf32>
    %620 = arith.mulf %619, %617 : vector<8x256xf32>
    %621 = vector.broadcast %140 : f32 to vector<8x256xf32>
    %622 = arith.mulf %621, %578 : vector<8x256xf32>
    %623 = arith.addf %620, %622 : vector<8x256xf32>
    %624 = vector.broadcast %141 : f32 to vector<8x256xf32>
    %625 = arith.mulf %624, %618 : vector<8x256xf32>
    %626 = arith.addf %623, %625 : vector<8x256xf32>
    %627 = arith.addf %616, %626 : vector<8x256xf32>
    %c1_i32_115 = arith.constant 1 : i32
    %628 = tpu.dynamic_rotate %582 by %c1_i32_115 dim 1 : vector<8x256xf32>, i32 -> vector<8x256xf32>
    %c255_i32_116 = arith.constant 255 : i32
    %629 = tpu.dynamic_rotate %582 by %c255_i32_116 dim 1 : vector<8x256xf32>, i32 -> vector<8x256xf32>
    %630 = vector.broadcast %142 : f32 to vector<8x256xf32>
    %631 = arith.mulf %630, %628 : vector<8x256xf32>
    %632 = vector.broadcast %143 : f32 to vector<8x256xf32>
    %633 = arith.mulf %632, %582 : vector<8x256xf32>
    %634 = arith.addf %631, %633 : vector<8x256xf32>
    %635 = vector.broadcast %144 : f32 to vector<8x256xf32>
    %636 = arith.mulf %635, %629 : vector<8x256xf32>
    %637 = arith.addf %634, %636 : vector<8x256xf32>
    %638 = arith.addf %627, %637 : vector<8x256xf32>
    %639 = arith.index_cast %150 : i32 to index
    %c0_117 = arith.constant 0 : index
    %640 = vector.load %arg1[%639, %c0_117] : memref<8x256xf32, #tpu.memory_space<vmem>>, vector<8x256xf32>
    %641 = arith.addf %638, %640 : vector<8x256xf32>
    %642 = arith.index_cast %150 : i32 to index
    %c0_118 = arith.constant 0 : index
    %643 = vector.load %arg10[%642, %c0_118] : memref<8x256xf32, #tpu.memory_space<vmem>>, vector<8x256xf32>
    tpu.vector_store %arg10[%642, %c0_118], %641 {strides = array<i32>} : memref<8x256xf32, #tpu.memory_space<vmem>>, vector<8x256xf32>,
    %c1_i32_119 = arith.constant 1 : i32
    return
  }
  func.func @transform_0(%arg0: i32) -> (i32, i32) {
    %c0_i32 = arith.constant 0 : i32
    %c0_i32_0 = arith.constant 0 : i32
    return %arg0, %c0_i32 : i32, i32
  }
  func.func @transform_1(%arg0: i32) -> (i32, i32) {
    %c0_i32 = arith.constant 0 : i32
    %c0_i32_0 = arith.constant 0 : i32
    return %arg0, %c0_i32 : i32, i32
  }
  func.func @transform_2(%arg0: i32) -> (i32, i32) {
    %c0_i32 = arith.constant 0 : i32
    %c0_i32_0 = arith.constant 0 : i32
    return %arg0, %c0_i32 : i32, i32
  }
  func.func @transform_3(%arg0: i32) -> i32 {
    %c0_i32 = arith.constant 0 : i32
    %c0_i32_0 = arith.constant 0 : i32
    return %c0_i32 : i32
  }
  func.func @transform_4(%arg0: i32) -> i32 {
    %c0_i32 = arith.constant 0 : i32
    %c0_i32_0 = arith.constant 0 : i32
    return %c0_i32 : i32
  }
  func.func @transform_5(%arg0: i32) -> i32 {
    %c0_i32 = arith.constant 0 : i32
    %c0_i32_0 = arith.constant 0 : i32
    return %c0_i32 : i32
  }
  func.func @transform_6(%arg0: i32) -> i32 {
    %c0_i32 = arith.constant 0 : i32
    %c0_i32_0 = arith.constant 0 : i32
    return %c0_i32 : i32
  }
  func.func @transform_7(%arg0: i32) -> i32 {
    %c0_i32 = arith.constant 0 : i32
    %c0_i32_0 = arith.constant 0 : i32
    return %c0_i32 : i32
  }
  func.func @transform_8(%arg0: i32) -> i32 {
    %c0_i32 = arith.constant 0 : i32
    %c0_i32_0 = arith.constant 0 : i32
    return %c0_i32 : i32
  }
  func.func @transform_9(%arg0: i32) -> (i32, i32) {
    %c0_i32 = arith.constant 0 : i32
    %c0_i32_0 = arith.constant 0 : i32
    return %arg0, %c0_i32 : i32, i32
  }
}

</mosaic_0001>

<bundles_post_ra>
// kernel: tpu_custom_call.1
= control target key start
LH: loop header
LB: loop body
LE: loop exit
PB: predicated region body
PF: predicated region fallthrough
CT: control target
= control target key end

     0   :  { %s2689_s0 = inlined_call_operand.hbm [shape: f32[8,256], index: 0, kind: input, shape index: {}]   ;;  %s2690_s1 = inlined_call_operand.hbm [shape: f32[8,256], index: 1, kind: input, shape index: {}]   ;;  %s2691_s2 = inlined_call_operand.hbm [shape: f32[8,256], index: 2, kind: input, shape index: {}]   ;;  %s2692_s3 = inlined_call_operand.vmem [shape: f32[45], index: 3, kind: input, shape index: {}]   ;;  %s2693_s4 = inlined_call_operand.vmem [shape: f32[5], index: 4, kind: input, shape index: {}]   ;;  %s2694_s5 = inlined_call_operand.vmem [shape: f32[75], index: 5, kind: input, shape index: {}]   ;;  %s2695_s6 = inlined_call_operand.vmem [shape: f32[5], index: 6, kind: input, shape index: {}]   ;;  %s2696_s7 = inlined_call_operand.vmem [shape: f32[15], index: 7, kind: input, shape index: {}]   ;;  %s2697_s8 = inlined_call_operand.<no memory space> [shape: f32[1], index: 8, kind: input, shape index: {}]   ;;  %s2698_s9 = inlined_call_operand.hbm [shape: f32[8,256], index: 9, kind: output, shape index: {}]  }
   0x1   :  { %2774 = sst [smem:[#allocation68_spill]] %s2697_s8 }
   0x2   :  { %2775 = sst [smem:[#allocation69_spill]] %s2698_s9 }
   0x3   :  { %15 = vsyncpa [#allocation4], 0 }
   0x4   :  { %16 = vsyncpa [#allocation8], 0 }
   0x5   :  { %17 = vsyncpa [#allocation6], 0 }
   0x6   :  { %18 = vsyncpa [#allocation12], 0 }
   0x7   :  { %19 = vsyncpa [#allocation15], 0  ;;  %s67_s11 = sshll.u32 %s2693_s4, 4  ;;  %s68_s11 = int_to_ptr.vmem [resolvable:$true] %s67_s11 }
   0x8   :  { %20 = vsyncpa [#allocation5], 0  ;;  %s1547_s12 = smov [#allocation7]  }
   0x9   :  { %s37_s13 = sshll.u32 %s1547_s12, 4  ;;  %s38_s13 = int_to_ptr.vmem [resolvable:$true] %s37_s13 }
   0xa   :  { %s1403_s14 = scalar_lea.vmem %s38_s13, 256  ;;  %p1408_p1 = scmp.lt.s32.totalorder %s38_s13, %s38_s13 }
   0xb   :  { %p1404_p0 = scmp.ne.s32.totalorder %s38_s13, %s1403_s14  ;;  %p1409_p2 = scmp.lt.s32.totalorder %s1403_s14, %s1403_s14 }
   0xd   :  { %p1410_p3 = por %p1409_p2, %p1408_p1 }
   0xf   :  { %p1411_p4 = pnand %p1410_p3, %p1404_p0 }
  0x11   :  { %1414 = shalt.err (!%p1411_p4)
}
  0x12   :  { %40 = dma.hbm_to_vmem [thread:$0]  %s2690_s1, 256, %s38_s13, [#allocation8]  }
  0x13   :  { %s1415_s17 = scalar_lea.vmem %s68_s11, 16  ;;  %p1420_p6 = scmp.lt.s32.totalorder %s68_s11, %s68_s11 }
  0x14   :  { %p1416_p5 = scmp.ne.s32.totalorder %s68_s11, %s1415_s17  ;;  %p1421_p7 = scmp.lt.s32.totalorder %s1415_s17, %s1415_s17 }
  0x16   :  { %p1422_p8 = por %p1421_p7, %p1420_p6 }
  0x18   :  { %p1423_p9 = pnand %p1422_p8, %p1416_p5 }
  0x1a   :  { %1426 = shalt.err (!%p1423_p9)
}
  0x1b   :  { %s1548_s4 = smov [#allocation11]   ;;  %s87_s20 = sshll.u32 %s2695_s6, 4  ;;  %s88_s20 = int_to_ptr.vmem [resolvable:$true] %s87_s20 }
  0x1c   :  { %70 = dma.vmem_to_smem %s68_s11, 16, %s1548_s4, [#allocation12]  }
  0x1d   :  { %s1427_s21 = scalar_lea.vmem %s88_s20, 16  ;;  %p1432_p11 = scmp.lt.s32.totalorder %s88_s20, %s88_s20 }
  0x1e   :  { %p1428_p10 = scmp.ne.s32.totalorder %s88_s20, %s1427_s21  ;;  %p1433_p12 = scmp.lt.s32.totalorder %s1427_s21, %s1427_s21 }
  0x20   :  { %p1434_p13 = por %p1433_p12, %p1432_p11 }
  0x22   :  { %p1435_p0 = pnand %p1434_p13, %p1428_p10 }
  0x24   :  { %1438 = shalt.err (!%p1435_p0)
}
  0x25   :  { %s1549_s1 = smov [#allocation14]   ;;  %s1550_s22 = smov [#allocation3]  }
  0x26   :  { %90 = dma.vmem_to_smem %s88_s20, 16, %s1549_s1, [#allocation15]  }
  0x27   :  { %s27_s23 = sshll.u32 %s1550_s22, 4  ;;  %s1551_s24 = smov [#allocation9]   ;;  %s28_s23 = int_to_ptr.vmem [resolvable:$true] %s27_s23 }
  0x28   :  { %s47_s25 = sshll.u32 %s1551_s24, 4  ;;  %s1447_s26 = scalar_lea.vmem %s28_s23, 256  ;;  %s48_s25 = int_to_ptr.vmem [resolvable:$true] %s47_s25 }
  0x29   :  { %p1448_p1 = scmp.ne.s32.totalorder %s28_s23, %s1447_s26  ;;  %p1452_p2 = scmp.lt.s32.totalorder %s28_s23, %s28_s23 }
  0x2a   :  { %p1453_p3 = scmp.lt.s32.totalorder %s1447_s26, %s1447_s26 }
  0x2c   :  { %p1454_p4 = por %p1453_p3, %p1452_p2 }
  0x2e   :  { %p1455_p5 = pnand %p1454_p4, %p1448_p1 }
  0x30   :  { %1458 = shalt.err (!%p1455_p5)
}
  0x31   :  { %30 = dma.hbm_to_vmem [thread:$0]  %s2689_s0, 256, %s28_s23, [#allocation4]  }
  0x32   :  { %s57_s30 = sshll.u32 %s2692_s3, 4  ;;  %s1467_s10 = scalar_lea.vmem %s48_s25, 256  ;;  %s58_s30 = int_to_ptr.vmem [resolvable:$true] %s57_s30 }
  0x33   :  { %p1468_p6 = scmp.ne.s32.totalorder %s48_s25, %s1467_s10  ;;  %p1472_p7 = scmp.lt.s32.totalorder %s48_s25, %s48_s25 }
  0x34   :  { %p1473_p8 = scmp.lt.s32.totalorder %s1467_s10, %s1467_s10 }
  0x36   :  { %p1474_p9 = por %p1473_p8, %p1472_p7 }
  0x38   :  { %p1475_p10 = pnand %p1474_p9, %p1468_p6 }
  0x3a   :  { %1478 = shalt.err (!%p1475_p10)
}
  0x3b   :  { %50 = dma.hbm_to_vmem [thread:$0]  %s2691_s2, 256, %s48_s25, [#allocation8]  }
  0x3c   :  { %s1479_s13 = scalar_lea.vmem %s58_s30, 16  ;;  %p1484_p12 = scmp.lt.s32.totalorder %s58_s30, %s58_s30 }
  0x3d   :  { %p1480_p11 = scmp.ne.s32.totalorder %s58_s30, %s1479_s13  ;;  %p1485_p13 = scmp.lt.s32.totalorder %s1479_s13, %s1479_s13 }
  0x3f   :  { %p1486_p0 = por %p1485_p13, %p1484_p12 }
  0x41   :  { %p1487_p1 = pnand %p1486_p0, %p1480_p11 }
  0x43   :  { %1490 = shalt.err (!%p1487_p1)
}
  0x44   :  { %s1552_s0 = smov [#allocation10]   ;;  %s77_s15 = sshll.u32 %s2694_s5, 4  ;;  %s78_s15 = int_to_ptr.vmem [resolvable:$true] %s77_s15 }
  0x45   :  { %60 = dma.vmem_to_smem %s58_s30, 16, %s1552_s0, [#allocation6]  }
  0x46   :  { %s97_s4 = sshll.u32 %s2696_s7, 4  ;;  %s1491_s2 = scalar_lea.vmem %s78_s15, 16  ;;  %s98_s4 = int_to_ptr.vmem [resolvable:$true] %s97_s4 }
  0x47   :  { %p1492_p2 = scmp.ne.s32.totalorder %s78_s15, %s1491_s2  ;;  %p1496_p3 = scmp.lt.s32.totalorder %s78_s15, %s78_s15 }
  0x48   :  { %p1497_p4 = scmp.lt.s32.totalorder %s1491_s2, %s1491_s2 }
  0x4a   :  { %p1498_p5 = por %p1497_p4, %p1496_p3 }
  0x4c   :  { %p1499_p6 = pnand %p1498_p5, %p1492_p2 }
  0x4e   :  { %1502 = shalt.err (!%p1499_p6)
}
  0x4f   :  { %s1553_s18 = smov [#allocation13]   ;;  %s1503_s19 = scalar_lea.vmem %s98_s4, 16 }
  0x50   :  { %80 = dma.vmem_to_smem %s78_s15, 16, %s1553_s18, [#allocation12]  }
  0x51   :  { %p1504_p7 = scmp.ne.s32.totalorder %s98_s4, %s1503_s19  ;;  %p1508_p8 = scmp.lt.s32.totalorder %s98_s4, %s98_s4 }
  0x52   :  { %p1509_p9 = scmp.lt.s32.totalorder %s1503_s19, %s1503_s19 }
  0x54   :  { %p1510_p10 = por %p1509_p9, %p1508_p8 }
  0x56   :  { %p1511_p11 = pnand %p1510_p10, %p1504_p7 }
  0x58   :  { %1514 = shalt.err (!%p1511_p11)
}
  0x59   :  { %s1554_s5 = smov [#allocation16]  }
  0x5a   :  { %100 = dma.vmem_to_smem %s98_s4, 16, %s1554_s5, [#allocation15]  }
  0x5b   :  { %1535 = dma.done.wait [#allocation4], 256  }
  0x5c   :  { %1536 = vsyncadd [#allocation4], 4294967040 }
  0x5d   :  { %1537 = dma.done.wait [#allocation8], 512  }
  0x5e   :  { %1538 = vsyncadd [#allocation8], 4294966784 }
  0x5f   :  { %1539 = dma.done.wait [#allocation6], 16  }
  0x60   :  { %1540 = vsyncadd [#allocation6], 4294967280 }
  0x61   :  { %1541 = dma.done.wait [#allocation12], 32  }
  0x62   :  { %1542 = vsyncadd [#allocation12], 4294967264 }
  0x63   :  { %1543 = dma.done.wait [#allocation15], 32  }
  0x64   :  { %1544 = vsyncadd [#allocation15], 4294967264 }
  0x65   :  { %127 = sfence }
  0x66   :  { %v1633_v0 = vld [vmem:[#allocation3] sm:$0xff]  ;;  %s2701_s7 = smov 127   ;;  %s2699_s20 = smov 1   ;;  %v283_v1 = vld [vmem:[#allocation3 + $0x8] sm:$0xff]  ;;  %v287_v2 = vld [vmem:[#allocation7 + $0x8] sm:$0xff]  ;;  %v2763_v6 = vmov 0.0   ;;  %v274_v7 = vlaneseq }
  0x67   :  { %299 = vrot.lane.b32.xlu1 %v1633_v0, %s2701_s7  ;;  %292 = vrot.lane.b32.xlu0 %v1633_v0, %s2699_s20  ;;  %v1641_v3 = vld [vmem:[#allocation7] sm:$0xff]  ;;  %v291_v4 = vld [vmem:[#allocation9 + $0x8] sm:$0xff]  ;;  %v1649_v5 = vld [vmem:[#allocation9] sm:$0xff]  ;;  %s1667_s21 = sld [smem:[#allocation10 + $0x2]] }
  0x68   :  { %s1669_s1 = sld [smem:[#allocation10 + $0xb]]  ;;  %v1739_v8 = vand.u32 127, %v274_v7 }
  0x69   :  { %s1671_s22 = sld [smem:[#allocation10 + $0x14]] }
  0x6a   :  { %s1673_s23 = sld [smem:[#allocation10 + $0x1d]]  ;;  %vm296_vm0 = vcmp.lt.s32.totalorder %v1739_v8, 1  ;;  %vm303_vm1 = vcmp.lt.s32.totalorder %v1739_v8, 127 }
  0x6b   :  { %301 = vrot.lane.b32.xlu1 %v283_v1, %s2701_s7  ;;  %294 = vrot.lane.b32.xlu0 %v283_v1, %s2699_s20  ;;  %s1675_s24 = sld [smem:[#allocation10 + $0x26]] }
  0x6c   :  { %s1677_s25 = sld [smem:[#allocation10]] }
  0x6d   :  { %s1679_s26 = sld [smem:[#allocation10 + $0x1]]  ;;  %v314_v10 = vstv %s1667_s21 }
  0x6e   :  { %s1681_s6 = sld [smem:[#allocation10 + $0x9]]  ;;  %v330_v11 = vstv %s1669_s1 }
  0x6f   :  { %388 = vrot.lane.b32.xlu1 %v287_v2, %s2699_s20  ;;  %386 = vrot.lane.b32.xlu0 %v1641_v3, %s2699_s20  ;;  %s1683_s27 = sld [smem:[#allocation10 + $0xa]]  ;;  %v346_v12 = vstv %s1671_s22 }
  0x70   :  { %2776 = sst [smem:[#allocation24_spill]] %s1673_s23  ;;  %v362_v14 = vstv %s1673_s23 }
  0x71   :  { %2777 = sst [smem:[#allocation25_spill]] %s1675_s24  ;;  %v378_v15 = vstv %s1675_s24 }
  0x72   :  { %s1685_s28 = sld [smem:[#allocation10 + $0x12]]  ;;  %v306_v16 = vstv %s1677_s25 }
  0x73   :  { %394 = vrot.lane.b32.xlu1 %v287_v2, %s2701_s7  ;;  %392 = vrot.lane.b32.xlu0 %v1641_v3, %s2701_s7  ;;  %s1687_s29 = sld [smem:[#allocation10 + $0x13]]  ;;  %v309_v9 = vstv %s1679_s26 }
  0x74   :  { %s1689_s30 = sld [smem:[#allocation10 + $0x1b]]  ;;  %v1760_v18 = vmul.f32 %v309_v9, %v1633_v0  ;;  %v322_v19 = vstv %s1681_s6 }
  0x75   :  { %s1691_s10 = sld [smem:[#allocation10 + $0x1c]]  ;;  %v325_v13 = vstv %s1683_s27 }
  0x76   :  { %s1693_s11 = sld [smem:[#allocation10 + $0x24]]  ;;  %v1768_v22 = vmul.f32 %v325_v13, %v1633_v0 }
  0x77   :  { %475 = vrot.lane.b32.xlu1 %v291_v4, %s2699_s20  ;;  %473 = vrot.lane.b32.xlu0 %v1649_v5, %s2699_s20  ;;  %s1695_s12 = sld [smem:[#allocation10 + $0x25]] }
  0x78   :  { %s1697_s13 = sld [smem:[#allocation10 + $0x3]]  ;;  %v338_v23 = vstv %s1685_s28 }
  0x79   :  { %s1699_s0 = sld [smem:[#allocation10 + $0x4]]  ;;  %v341_v17 = vstv %s1687_s29 }
  0x7a   :  { %s1701_s3 = sld [smem:[#allocation10 + $0xc]]  ;;  %v1777_v26 = vmul.f32 %v341_v17, %v1633_v0  ;;  %v354_v27 = vstv %s1689_s30 }
  0x7b   :  { %481 = vrot.lane.b32.xlu1 %v291_v4, %s2701_s7  ;;  %479 = vrot.lane.b32.xlu0 %v1649_v5, %s2701_s7  ;;  %s1703_s14 = sld [smem:[#allocation10 + $0xd]]  ;;  %v357_v20 = vstv %s1691_s10 }
  0x7c   :  { %s1705_s15 = sld [smem:[#allocation10 + $0x15]]  ;;  %v1785_v30 = vmul.f32 %v357_v20, %v1633_v0  ;;  %v370_v31 = vstv %s1693_s11 }
  0x7d   :  { %s1707_s16 = sld [smem:[#allocation10 + $0x16]]  ;;  %v373_v21 = vstv %s1695_s12 }
  0x7e   :  { %s1709_s17 = sld [smem:[#allocation10 + $0x1e]]  ;;  %v1789_v32 = vmul.f32 %v373_v21, %v1633_v0  ;;  %v398_v34 = vstv %s1697_s13 }
  0x7f   :  { %1354 = vrot.lane.b32.xlu1 %v2763_v6, %s2699_s20  ;;  %s1711_s4 = sld [smem:[#allocation10 + $0x1f]]  ;;  %v401_v24 = vstv %s1699_s0 }
  0x80   :  { %s1713_s2 = sld [smem:[#allocation10 + $0x27]]  ;;  %v1796_v35 = vmul.f32 %v401_v24, %v1641_v3  ;;  %v413_v36 = vstv %s1701_s3 }
  0x81   :  { %s1715_s18 = sld [smem:[#allocation10 + $0x28]]  ;;  %v416_v25 = vstv %s1703_s14 }
  0x82   :  { %s1717_s19 = sld [smem:[#allocation10 + $0x5]]  ;;  %v1800_v37 = vmul.f32 %v416_v25, %v1641_v3  ;;  %v428_v38 = vstv %s1705_s15 }
  0x83   :  { %1359 = vrot.lane.b32.xlu1 %v2763_v6, %s2701_s7  ;;  %s1719_s5 = sld [smem:[#allocation10 + $0xe]]  ;;  %v431_v28 = vstv %s1707_s16 }
  0x84   :  { %2778 = sst [smem:[#allocation26_spill]] %s1709_s17  ;;  %v1806_v39 = vmul.f32 %v431_v28, %v1641_v3 }
  0x85   :  { %s1725_s9 = sld [smem:[#allocation10 + $0x29]]  ;;  %v446_v29 = vstv %s1711_s4 }
  0x86   :  { %2779 = sst [smem:[#allocation27_spill]] %s1713_s2  ;;  %v1810_v41 = vmul.f32 %v446_v29, %v1641_v3 }
  0x87   :  { %1364 = vrot.lane.b32.xlu1 %v2763_v6, %s2699_s20  ;;  %s1727_s8 = sld [smem:[#allocation11]]  ;;  %v461_v33 = vstv %s1715_s18 }
  0x88   :  { %2780 = sst [smem:[#allocation28_spill]] %s1717_s19  ;;  %v1816_v45 = vmul.f32 %v461_v33, %v1641_v3 }
  0x89   :  { %2781 = sst [smem:[#allocation29_spill]] %s1719_s5 }
  0x8a   :  { %s1729_s2 = sld [smem:[#allocation11 + $0x1]] }
  0x8b   :  { %1369 = vrot.lane.b32.xlu1 %v2763_v6, %s2701_s7  ;;  %s1723_s7 = sld [smem:[#allocation10 + $0x20]] }
  0x8c   :  { %2783 = sst [smem:[#allocation31_spill]] %s1725_s9 }
  0x8d   :  { %s1731_s19 = sld [smem:[#allocation11 + $0x2]]  ;;  %v319_v52 = vstv %s1727_s8  ;;  %s2800_s8 = smov 127  }
  0x8e   :  { %s1733_s5 = sld [smem:[#allocation11 + $0x3]] }
  0x8f   :  { %935 = vrot.lane.b32.xlu1 %v2763_v6, %s2699_s20  ;;  %s1721_s20 = sld [smem:[#allocation10 + $0x17]] }
  0x90   :  { %2784 = sst [smem:[#allocation32_spill]] %s1729_s2 }
  0x91   :  { %s1737_s17 = sld [smem:[#allocation10 + $0x6]]  ;;  %v451_v49 = vstv %s1723_s7  ;;  %s2801_s7 = smov 1  }
  0x92   :  { %s1741_s9 = sld [smem:[#allocation10 + $0x7]] }
  0x93   :  { %s1744_s2 = sld [smem:[#allocation10 + $0xf]]  ;;  %v351_v56 = vstv %s1731_s19 }
  0x94   :  { %s1765_s26 = sld [smem:[#allocation10 + $0x22]]  ;;  %v367_v57 = vstv %s1733_s5 }
  0x95   :  { %2782 = sst [smem:[#allocation30_spill]] %s1721_s20 }
  0x96   :  { %s1735_s20 = sld [smem:[#allocation11 + $0x4]] }
  0x97   :  { %2786 = sst [smem:[#allocation34_spill]] %s1737_s17 }
  0x98   :  { %s1756_s17 = sld [smem:[#allocation10 + $0x19]]  ;;  %v488_v51 = vstv %s1741_s9 }
  0x99   :  { %s1773_s27 = sld [smem:[#allocation10 + $0x2b]]  ;;  %v1839_v0 = vmul.f32 %v488_v51, %v1649_v5  ;;  %v500_v1 = vstv %s1744_s2 }
  0x9a   :  { %s2787_s29 = sld [smem:[#allocation26_spill]]  ;;  %v533_v58 = vstv %s1765_s26 }
  0x9b   :  { %s1782_s10 = sld [smem:[#allocation10 + $0x18]]  ;;  %v1857_v13 = vmul.f32 %v533_v58, %v1649_v5 }
  0x9c   :  { %2785 = sst [smem:[#allocation33_spill]] %s1735_s20 }
  0x9d   :  { %s1750_s20 = sld [smem:[#allocation10 + $0x10]] }
  0x9e   :  { %s2788_s12 = sld [smem:[#allocation27_spill]]  ;;  %v518_v55 = vstv %s1756_s17 }
  0x9f   :  { %s2789_s0 = sld [smem:[#allocation28_spill]]  ;;  %v548_v59 = vstv %s1773_s27  ;;  %v1851_v7 = vmul.f32 %v518_v55, %v1649_v5 }
  0xa0   :  { %s1792_s14 = sld [smem:[#allocation10 + $0x21]]  ;;  %v443_v40 = vstv %s2787_s29  ;;  %v1861_v20 = vmul.f32 %v548_v59, %v1649_v5 }
  0xa1   :  { %s2790_s24 = sld [smem:[#allocation29_spill]]  ;;  %v515_v4 = vstv %s1782_s10 }
  0xa2   :  { %s2791_s30 = sld [smem:[#allocation30_spill]] }
  0xa3   :  { %s2792_s11 = sld [smem:[#allocation31_spill]]  ;;  %v503_v54 = vstv %s1750_s20 }
  0xa4   :  { %s1802_s16 = sld [smem:[#allocation10 + $0x2a]]  ;;  %v458_v44 = vstv %s2788_s12  ;;  %v1847_v3 = vmul.f32 %v503_v54, %v1649_v5 }
  0xa5   :  { %s2793_s4 = sld [smem:[#allocation32_spill]]  ;;  %v406_v46 = vstv %s2789_s0 }
  0xa6   :  { %s1812_s18 = sld [smem:[#allocation10 + $0x8]]  ;;  %v530_v9 = vstv %s1792_s14 }
  0xa7   :  { %v421_v47 = vstv %s2790_s24  ;;  %s1820_s15 = sld [smem:[#allocation10 + $0x11]] }
  0xa8   :  { %s2794_s29 = sld [smem:[#allocation33_spill]]  ;;  %v436_v48 = vstv %s2791_s30 }
  0xa9   :  { %s2795_s23 = sld [smem:[#allocation34_spill]]  ;;  %v466_v50 = vstv %s2792_s11 }
  0xaa   :  { %s1834_s24 = sld [smem:[#allocation10 + $0x1a]]  ;;  %v545_v17 = vstv %s1802_s16 }
  0xab   :  { %v335_v53 = vstv %s2793_s4  ;;  %s1842_s9 = sld [smem:[#allocation10 + $0x23]] }
  0xac   :  { %s1853_s20 = sld [smem:[#allocation10 + $0x2c]]  ;;  %v493_v5 = vstv %s1812_s18 }
  0xad   :  { %v508_v54 = vstv %s1820_s15  ;;  %s1993_s1 = sld [smem:[#allocation13 + $0x5]] }
  0xae   :  { %v383_v62 = vstv %s2794_s29  ;;  %s1995_s22 = sld [smem:[#allocation13 + $0x14]] }
  0xaf   :  { %v485_v63 = vstv %s2795_s23  ;;  %s1997_s23 = sld [smem:[#allocation13 + $0x23]] }
  0xb0   :  { %s2001_s6 = sld [smem:[#allocation13 + $0x41]] }
  0xb1   :  { %s2003_s28 = sld [smem:[#allocation13 + $0x1]] }
  0xb2   :  { %s2005_s13 = sld [smem:[#allocation13 + $0x10]] }
  0xb3   :  { %2802 = sst [smem:[#allocation27_spill]] %s1993_s1 }
  0xb4   :  { %2803 = sst [smem:[#allocation28_spill]] %s1995_s22 }
  0xb5   :  { %2804 = sst [smem:[#allocation30_spill]] %s1997_s23 }
  0xb6   :  { %2806 = sst [smem:[#allocation32_spill]] %s2001_s6 }
  0xb7   :  { %s2007_s3 = sld [smem:[#allocation13 + $0x1f]] }
  0xb8   :  { %s2009_s2 = sld [smem:[#allocation13 + $0x2e]] }
  0xb9   :  { %s2011_s19 = sld [smem:[#allocation13 + $0x3d]] }
  0xba   :  { %s2013_s5 = sld [smem:[#allocation13 + $0x4]] }
  0xbb   :  { %s2015_s27 = sld [smem:[#allocation13 + $0x13]] }
  0xbc   :  { %s2017_s29 = sld [smem:[#allocation13 + $0x22]] }
  0xbd   :  { %s2019_s10 = sld [smem:[#allocation13 + $0x31]] }
  0xbe   :  { %s2021_s12 = sld [smem:[#allocation13 + $0x40]] }
  0xbf   :  { %s2023_s0 = sld [smem:[#allocation13 + $0x7]] }
  0xc0   :  { %s2025_s14 = sld [smem:[#allocation13 + $0x16]] }
  0xc1   :  { %s2027_s30 = sld [smem:[#allocation13 + $0x25]] }
  0xc2   :  { %s2029_s11 = sld [smem:[#allocation13 + $0x34]] }
  0xc3   :  { %s2031_s16 = sld [smem:[#allocation13 + $0x43]] }
  0xc4   :  { %s2033_s4 = sld [smem:[#allocation13 + $0xa]] }
  0xc5   :  { %s2035_s18 = sld [smem:[#allocation13 + $0x19]] }
  0xc6   :  { %s2037_s15 = sld [smem:[#allocation13 + $0x28]] }
  0xc7   :  { %s2043_s17 = sld [smem:[#allocation13 + $0x1c]] }
  0xc8   :  { %s2045_s26 = sld [smem:[#allocation13 + $0xd]] }
  0xc9   :  { %s2047_s25 = sld [smem:[#allocation13 + $0x3a]] }
  0xca   :  { %2807 = sst [smem:[#allocation33_spill]] %s2033_s4 }
  0xcb   :  { %2808 = sst [smem:[#allocation34_spill]] %s2035_s18 }
  0xcc   :  { %2809 = sst [smem:[#allocation24_spill]] %s2037_s15 }
  0xcd   :  { %2812 = sst [smem:[#allocation29_spill]] %s2043_s17 }
  0xce   :  { %2813 = sst [smem:[#allocation35_spill]] %s2045_s26 }
  0xcf   :  { %2814 = sst [smem:[#allocation36_spill]] %s2047_s25 }
  0xd0   :  { %s2049_s21 = sld [smem:[#allocation13 + $0x2b]] }
  0xd1   :  { %s2055_s4 = sld [smem:[#allocation13 + $0xf]] }
  0xd2   :  { %s2057_s18 = sld [smem:[#allocation13 + $0x1e]] }
  0xd3   :  { %s2059_s15 = sld [smem:[#allocation13 + $0x2d]] }
  0xd4   :  { %s2065_s17 = sld [smem:[#allocation13 + $0x1a]] }
  0xd5   :  { %s2067_s26 = sld [smem:[#allocation13 + $0x29]] }
  0xd6   :  { %2815 = sst [smem:[#allocation37_spill]] %s2049_s21 }
  0xd7   :  { %2818 = sst [smem:[#allocation40_spill]] %s2055_s4 }
  0xd8   :  { %2819 = sst [smem:[#allocation41_spill]] %s2057_s18 }
  0xd9   :  { %v300_v42 = vpop.permute.xlu1 %299  ;;  %v293_v43 = vpop.permute.xlu0 %292  ;;  %2820 = sst [smem:[#allocation42_spill]] %s2059_s15 }
  0xda   :  { %2823 = sst [smem:[#allocation45_spill]] %s2065_s17 }
  0xdb   :  { %2824 = sst [smem:[#allocation46_spill]] %s2067_s26 }
  0xdc   :  { %s2069_s25 = sld [smem:[#allocation13 + $0x38]] }
  0xdd   :  { %v302_v60 = vpop.permute.xlu1 %301  ;;  %v295_v61 = vpop.permute.xlu0 %294  ;;  %s2071_s21 = sld [smem:[#allocation13 + $0x47]] }
  0xde   :  { %v298_v2 = vsel %vm296_vm0, %v295_v61, %v293_v43  ;;  %v304_v21 = vsel %vm303_vm1, %v300_v42, %v302_v60  ;;  %s2077_s4 = sld [smem:[#allocation13 + $0x20]] }
  0xdf   :  { %v307_v24 = vmul.f32 %v306_v16, %v298_v2  ;;  %v323_v25 = vmul.f32 %v322_v19, %v298_v2  ;;  %v339_v28 = vmul.f32 %v338_v23, %v298_v2  ;;  %v355_v29 = vmul.f32 %v354_v27, %v298_v2  ;;  %s2079_s18 = sld [smem:[#allocation13 + $0x2f]] }
  0xe0   :  { %v371_v33 = vmul.f32 %v370_v31, %v298_v2  ;;  %v315_v27 = vmul.f32 %v314_v10, %v304_v21  ;;  %v347_v59 = vmul.f32 %v346_v12, %v304_v21  ;;  %v363_v60 = vmul.f32 %v362_v14, %v304_v21  ;;  %s2085_s17 = sld [smem:[#allocation14 + $0x1]] }
  0xe1   :  { %v389_v43 = vpop.permute.xlu1 %388  ;;  %v387_v51 = vpop.permute.xlu0 %386  ;;  %v312_v42 = vadd.f32 %v1760_v18, %v307_v24  ;;  %v328_v16 = vadd.f32 %v1768_v22, %v323_v25  ;;  %v344_v19 = vadd.f32 %v1777_v26, %v339_v28  ;;  %v360_v31 = vadd.f32 %v1785_v30, %v355_v29  ;;  %s2292_s26 = sld [smem:[#allocation13 + $0x3b]] }
  0xe2   :  { %v391_v23 = vsel %vm296_vm0, %v389_v43, %v387_v51  ;;  %v376_v55 = vadd.f32 %v1789_v32, %v371_v33  ;;  %v331_v18 = vmul.f32 %v330_v11, %v304_v21  ;;  %v379_v10 = vmul.f32 %v378_v15, %v304_v21  ;;  %2825 = sst [smem:[#allocation47_spill]] %s2069_s25 }
  0xe3   :  { %v399_v58 = vmul.f32 %v398_v34, %v391_v23  ;;  %v414_v22 = vmul.f32 %v413_v36, %v391_v23  ;;  %v429_v26 = vmul.f32 %v428_v38, %v391_v23  ;;  %v523_v32 = vstv %s1834_s24  ;;  %s1999_s24 = sld [smem:[#allocation13 + $0x32]] }
  0xe4   :  { %v538_v34 = vstv %s1842_s9  ;;  %v317_v11 = vadd.f32 %v315_v27, %v312_v42  ;;  %v333_v2 = vadd.f32 %v331_v18, %v328_v16  ;;  %v349_v12 = vadd.f32 %v347_v59, %v344_v19  ;;  %s2039_s9 = sld [smem:[#allocation13 + $0x37]] }
  0xe5   :  { %v395_v61 = vpop.permute.xlu1 %394  ;;  %v393_v30 = vpop.permute.xlu0 %392  ;;  %v553_v24 = vstv %s1853_s20  ;;  %v365_v36 = vadd.f32 %v363_v60, %v360_v31  ;;  %v381_v14 = vadd.f32 %v379_v10, %v376_v55  ;;  %v404_v38 = vadd.f32 %v1796_v35, %v399_v58  ;;  %s2041_s20 = sld [smem:[#allocation13 + $0x46]] }
  0xe6   :  { %v444_v15 = vmul.f32 %v443_v40, %v391_v23  ;;  %v419_v21 = vadd.f32 %v1800_v37, %v414_v22  ;;  %v434_v25 = vadd.f32 %v1806_v39, %v429_v26  ;;  %v459_v28 = vmul.f32 %v458_v44, %v391_v23  ;;  %2826 = sst [smem:[#allocation48_spill]] %s2071_s21 }
  0xe7   :  { %v396_v29 = vsel %vm303_vm1, %v393_v30, %v395_v61  ;;  %v320_v39 = vadd.f32 %v319_v52, %v317_v11  ;;  %v336_v44 = vadd.f32 %v335_v53, %v333_v2  ;;  %v384_v23 = vadd.f32 %v383_v62, %v381_v14  ;;  %2829 = sst [smem:[#allocation51_spill]] %s2077_s4 }
  0xe8   :  { %v407_v33 = vmul.f32 %v406_v46, %v396_v29  ;;  %v422_v43 = vmul.f32 %v421_v47, %v396_v29  ;;  %v437_v35 = vmul.f32 %v436_v48, %v396_v29  ;;  %v452_v37 = vmul.f32 %v451_v49, %v396_v29  ;;  %2830 = sst [smem:[#allocation52_spill]] %s2079_s18 }
  0xe9   :  { %v476_v40 = vpop.permute.xlu1 %475  ;;  %v474_v51 = vpop.permute.xlu0 %473  ;;  %v467_v42 = vmul.f32 %v466_v50, %v396_v29  ;;  %v449_v16 = vadd.f32 %v1810_v41, %v444_v15  ;;  %v352_v47 = vadd.f32 %v351_v56, %v349_v12  ;;  %v368_v48 = vadd.f32 %v367_v57, %v365_v36  ;;  %2805 = sst [smem:[#allocation31_spill]] %s1999_s24 }
  0xea   :  { %v478_v46 = vsel %vm296_vm0, %v476_v40, %v474_v51  ;;  %v409_v19 = vadd.f32 %v407_v33, %v404_v38  ;;  %v464_v49 = vadd.f32 %v1816_v45, %v459_v28  ;;  %v424_v41 = vadd.f32 %v422_v43, %v419_v21  ;;  %2810 = sst [smem:[#allocation25_spill]] %s2039_s9 }
  0xeb   :  { %v486_v52 = vmul.f32 %v485_v63, %v478_v46  ;;  %v501_v53 = vmul.f32 %v500_v1, %v478_v46  ;;  %v516_v50 = vmul.f32 %v515_v4, %v478_v46  ;;  %v439_v27 = vadd.f32 %v437_v35, %v434_v25  ;;  %2811 = sst [smem:[#allocation26_spill]] %s2041_s20 }
  0xec   :  { %v454_v56 = vadd.f32 %v452_v37, %v449_v16  ;;  %v411_v55 = vadd.f32 %v409_v19, %v320_v39  ;;  %v469_v58 = vadd.f32 %v467_v42, %v464_v49  ;;  %v531_v1 = vmul.f32 %v530_v9, %v478_v46  ;;  %s2061_s9 = sld [smem:[#allocation13 + $0x3c]] }
  0xed   :  { %v482_v31 = vpop.permute.xlu1 %481  ;;  %v480_v57 = vpop.permute.xlu0 %479  ;;  %v491_v45 = vadd.f32 %v1839_v0, %v486_v52  ;;  %v506_v18 = vadd.f32 %v1847_v3, %v501_v53  ;;  %v521_v63 = vadd.f32 %v1851_v7, %v516_v50  ;;  %v546_v4 = vmul.f32 %v545_v17, %v478_v46  ;;  %s2063_s20 = sld [smem:[#allocation13 + $0xb]] }
  0xee   :  { %v483_v62 = vsel %vm303_vm1, %v480_v57, %v482_v31  ;;  %v426_v10 = vadd.f32 %v424_v41, %v336_v44  ;;  %v536_v0 = vadd.f32 %v1857_v13, %v531_v1  ;;  %v441_v7 = vadd.f32 %v439_v27, %v352_v47  ;;  %2833 = sst [smem:[#allocation55_spill]] %s2085_s17 }
  0xef   :  { %v494_v59 = vmul.f32 %v493_v5, %v483_v62  ;;  %v509_v22 = vmul.f32 %v508_v54, %v483_v62  ;;  %v524_v26 = vmul.f32 %v523_v32, %v483_v62  ;;  %v539_v60 = vmul.f32 %v538_v34, %v483_v62  ;;  %s2087_s25 = sld [smem:[#allocation14 + $0x2]] }
  0xf0   :  { %v551_v3 = vadd.f32 %v1861_v20, %v546_v4  ;;  %v554_v61 = vmul.f32 %v553_v24, %v483_v62  ;;  %v456_v17 = vadd.f32 %v454_v56, %v368_v48  ;;  %v471_v2 = vadd.f32 %v469_v58, %v384_v23  ;;  %s2089_s21 = sld [smem:[#allocation14 + $0x3]] }
  0xf1   :  { %v496_v30 = vadd.f32 %v494_v59, %v491_v45  ;;  %v511_v9 = vadd.f32 %v509_v22, %v506_v18  ;;  %v526_v11 = vadd.f32 %v524_v26, %v521_v63  ;;  %v541_v12 = vadd.f32 %v539_v60, %v536_v0  ;;  %s2093_s4 = sld [smem:[#allocation13 + $0x3]]  ;;  %v2101_v21 = vpop.permute.xlu1 %1354 }
  0xf2   :  { %v556_v36 = vadd.f32 %v554_v61, %v551_v3  ;;  %2821 = sst [smem:[#allocation43_spill]] %s2061_s9  ;;  %v692_v25 = vstv %s1993_s1  ;;  %v707_v28 = vstv %s1995_s22  ;;  %v722_v29 = vstv %s1997_s23 }
  0xf3   :  { %v498_v14 = vadd.f32 %v496_v30, %v411_v55  ;;  %v513_v5 = vadd.f32 %v511_v9, %v426_v10  ;;  %v528_v38 = vadd.f32 %v526_v11, %v441_v7  ;;  %v543_v54 = vadd.f32 %v541_v12, %v456_v17  ;;  %2822 = sst [smem:[#allocation44_spill]] %s2063_s20 }
  0xf4   :  { %v558_v32 = vadd.f32 %v556_v36, %v471_v2  ;;  %s2081_s9 = sld [smem:[#allocation13 + $0x3e]]  ;;  %v737_v33 = vstv %s1999_s24  ;;  %v752_v43 = vstv %s2001_s6  ;;  %v595_v35 = vstv %s2003_s28 }
  0xf5   :  { %v1951_v34 = vmax.f32 %v498_v14, 0.0  ;;  %v1953_v15 = vmax.f32 %v513_v5, 0.0  ;;  %v1959_v13 = vmax.f32 %v543_v54, 0.0  ;;  %v1969_v20 = vmax.f32 %v528_v38, 0.0  ;;  %s2083_s20 = sld [smem:[#allocation14]]  ;;  %v2121_v37 = vpop.permute.xlu1 %1359 }
  0xf6   :  { %v1983_v24 = vmax.f32 %v558_v32, 0.0  ;;  %2834 = sst [smem:[#allocation56_spill]] %s2087_s25  ;;  %v611_v40 = vstv %s2005_s13  ;;  %v627_v51 = vstv %s2007_s3  ;;  %v643_v39 = vstv %s2009_s2 }
  0xf7   :  { %678 = vrot.lane.b32.xlu1 %v1953_v15, %s2800_s8  ;;  %580 = vrot.lane.b32.xlu0 %v1951_v34, %s2801_s7  ;;  %2835 = sst [smem:[#allocation57_spill]] %s2089_s21  ;;  %v659_v44 = vstv %s2011_s19  ;;  %v687_v42 = vstv %s2013_s5  ;;  %v1356_v1 = vunpack.i.l.bf16 %v2101_v21  ;;  %v1362_v0 = vunpack.i.h.bf16 %v2121_v37 }
  0xf8   :  { %2837 = sst [smem:[#allocation59_spill]] %s2093_s4  ;;  %v702_v46 = vstv %s2015_s27  ;;  %v717_v16 = vstv %s2017_s29  ;;  %v732_v47 = vstv %s2019_s10  ;;  %v747_v48 = vstv %s2021_s12 }
  0xf9   :  { %s2095_s18 = sld [smem:[#allocation13 + $0x12]]  ;;  %v774_v19 = vstv %s2023_s0  ;;  %v789_v49 = vstv %s2025_s14  ;;  %v804_v52 = vstv %s2027_s30  ;;  %v819_v53 = vstv %s2029_s11  ;;  %v2161_v4 = vpop.permute.xlu1 %1364 }
  0xfa   :  { %2831 = sst [smem:[#allocation53_spill]] %s2081_s9  ;;  %v834_v50 = vstv %s2031_s16  ;;  %v640_v26 = vstv %s2059_s15  ;;  %v1361_v3 = vunpack.i.l.bf16 %v2121_v37  ;;  %v2176_v61 = vmul.f32 %v595_v35, %v1951_v34 }
  0xfb   :  { %852 = vrot.lane.b32.xlu1 %v1959_v13, %s2800_s8  ;;  %586 = vrot.lane.b32.xlu0 %v1951_v34, %s2800_s8  ;;  %2832 = sst [smem:[#allocation54_spill]] %s2083_s20  ;;  %v2182_v30 = vmul.f32 %v611_v40, %v1951_v34  ;;  %v2185_v9 = vmul.f32 %v627_v51, %v1951_v34  ;;  %v2188_v11 = vmul.f32 %v643_v39, %v1951_v34 }
  0xfc   :  { %s2097_s9 = sld [smem:[#allocation13 + $0x21]]  ;;  %v2195_v12 = vmul.f32 %v659_v44, %v1951_v34  ;;  %v2212_v34 = vmul.f32 %v687_v42, %v1953_v15  ;;  %v2215_v39 = vmul.f32 %v702_v46, %v1953_v15  ;;  %v2224_v2 = vmul.f32 %v732_v47, %v1953_v15 }
  0xfd   :  { %s2099_s20 = sld [smem:[#allocation13 + $0x30]]  ;;  %v2207_v35 = vpop.permute.xlu1 %1369  ;;  %v2227_v42 = vmul.f32 %v747_v48, %v1953_v15  ;;  %v2233_v5 = vmul.f32 %v774_v19, %v1969_v20  ;;  %v2239_v47 = vmul.f32 %v804_v52, %v1969_v20  ;;  %v2249_v19 = vmul.f32 %v819_v53, %v1969_v20 }
  0xfe   :  { %s2103_s25 = sld [smem:[#allocation13 + $0x3f]]  ;;  %v1372_v46 = vunpack.i.h.bf16 %v2207_v35  ;;  %v2257_v52 = vmul.f32 %v834_v50, %v1969_v20 }
  0xff   :  { %672 = vrot.lane.b32.xlu0 %v1953_v15, %s2801_s7  ;;  %941 = vrot.lane.b32.xlu1 %v2763_v6, %s2800_s8  ;;  %s2105_s21 = sld [smem:[#allocation13 + $0x6]] }
 0x100   :  { %s2109_s4 = sld [smem:[#allocation13 + $0x24]] }
 0x101   :  { %s2843_s22 = sld [smem:[#allocation33_spill]] }
 0x102   :  { %s2844_s1 = sld [smem:[#allocation34_spill]] }
 0x103   :  { %759 = vrot.lane.b32.xlu0 %v1969_v20, %s2801_s7  ;;  %1374 = vrot.lane.b32.xlu1 %v2763_v6, %s2801_s7  ;;  %2838 = sst [smem:[#allocation60_spill]] %s2099_s20 }
 0x104   :  { %s2113_s20 = sld [smem:[#allocation13 + $0x33]] }
 0x105   :  { %2839 = sst [smem:[#allocation61_spill]] %s2105_s21 }
 0x106   :  { %2840 = sst [smem:[#allocation62_spill]] %s2109_s4 }
 0x107   :  { %765 = vrot.lane.b32.xlu0 %v1969_v20, %s2800_s8  ;;  %1379 = vrot.lane.b32.xlu1 %v2763_v6, %s2800_s8  ;;  %s2119_s21 = sld [smem:[#allocation13 + $0x42]]  ;;  %v861_v23 = vstv %s2843_s22 }
 0x108   :  { %s2127_s23 = sld [smem:[#allocation13 + $0x8]]  ;;  %v876_v41 = vstv %s2844_s1 }
 0x109   :  { %s2846_s24 = sld [smem:[#allocation24_spill]]  ;;  %v2267_v44 = vmul.f32 %v876_v41, %v1959_v13 }
 0x10a   :  { %2841 = sst [smem:[#allocation63_spill]] %s2113_s20 }
 0x10b   :  { %846 = vrot.lane.b32.xlu0 %v1959_v13, %s2801_s7  ;;  %1384 = vrot.lane.b32.xlu1 %v2763_v6, %s2801_s7  ;;  %s2847_s6 = sld [smem:[#allocation25_spill]] }
 0x10c   :  { %s2848_s28 = sld [smem:[#allocation26_spill]] }
 0x10d   :  { %2842 = sst [smem:[#allocation64_spill]] %s2119_s21 }
 0x10e   :  { %2845 = sst [smem:[#allocation33_spill]] %s2127_s23 }
 0x10f   :  { %933 = vrot.lane.b32.xlu0 %v1983_v24, %s2801_s7  ;;  %1389 = vrot.lane.b32.xlu1 %v2763_v6, %s2800_s8  ;;  %s2849_s21 = sld [smem:[#allocation29_spill]]  ;;  %v891_v27 = vstv %s2846_s24 }
 0x110   :  { %s2133_s20 = sld [smem:[#allocation13 + $0x17]] }
 0x111   :  { %s2851_s13 = sld [smem:[#allocation35_spill]]  ;;  %v906_v56 = vstv %s2847_s6 }
 0x112   :  { %s2852_s3 = sld [smem:[#allocation36_spill]]  ;;  %v921_v31 = vstv %s2848_s28 }
 0x113   :  { %939 = vrot.lane.b32.xlu0 %v1983_v24, %s2800_s8  ;;  %1151 = vrot.lane.b32.xlu1 %v2763_v6, %s2801_s7  ;;  %s2051_s7 = sld [smem:[#allocation13 + $0x49]]  ;;  %v2221_v6 = vmul.f32 %v717_v16, %v1953_v15  ;;  %v2236_v16 = vmul.f32 %v789_v49, %v1969_v20  ;;  %v2262_v15 = vmul.f32 %v861_v23, %v1959_v13  ;;  %v2289_v23 = vpop.permute.xlu1 %935 }
 0x114   :  { %s2053_s8 = sld [smem:[#allocation13]]  ;;  %v2275_v49 = vmul.f32 %v891_v27, %v1959_v13  ;;  %v2280_v20 = vmul.f32 %v906_v56, %v1959_v13  ;;  %v2285_v50 = vmul.f32 %v921_v31, %v1959_v13 }
 0x115   :  { %s2853_s2 = sld [smem:[#allocation37_spill]]  ;;  %v963_v57 = vstv %s2849_s21 }
 0x116   :  { %2850 = sst [smem:[#allocation34_spill]] %s2133_s20  ;;  %v2297_v27 = vmul.f32 %v963_v57, %v1983_v24 }
 0x117   :  { %s2139_s4 = sld [smem:[#allocation13 + $0x26]]  ;;  %v948_v55 = vstv %s2851_s13 }
 0x118   :  { %s2143_s5 = sld [smem:[#allocation13 + $0x35]]  ;;  %v993_v58 = vstv %s2852_s3  ;;  %v2302_v13 = vmul.f32 %v948_v55, %v1983_v24 }
 0x119   :  { %2816 = sst [smem:[#allocation38_spill]] %s2051_s7  ;;  %v2307_v56 = vmul.f32 %v993_v58, %v1983_v24 }
 0x11a   :  { %2817 = sst [smem:[#allocation39_spill]] %s2053_s8 }
 0x11b   :  { %s2073_s7 = sld [smem:[#allocation13 + $0x2]]  ;;  %v978_v45 = vstv %s2853_s2 }
 0x11c   :  { %s2075_s8 = sld [smem:[#allocation13 + $0x11]]  ;;  %v2316_v57 = vmul.f32 %v978_v45, %v1983_v24 }
 0x11d   :  { %s2854_s19 = sld [smem:[#allocation38_spill]] }
 0x11e   :  { %2855 = sst [smem:[#allocation24_spill]] %s2139_s4 }
 0x11f   :  { %2856 = sst [smem:[#allocation25_spill]] %s2143_s5 }
 0x120   :  { %s2857_s27 = sld [smem:[#allocation39_spill]] }
 0x121   :  { %2827 = sst [smem:[#allocation49_spill]] %s2073_s7  ;;  %v600_v38 = vstv %s2073_s7 }
 0x122   :  { %2828 = sst [smem:[#allocation50_spill]] %s2075_s8 }
 0x123   :  { %s2091_s8 = sld [smem:[#allocation14 + $0x4]]  ;;  %v1008_v18 = vstv %s2854_s19 }
 0x124   :  { %s2858_s29 = sld [smem:[#allocation40_spill]]  ;;  %v2321_v55 = vmul.f32 %v1008_v18, %v1983_v24 }
 0x125   :  { %s2147_s10 = sld [smem:[#allocation13 + $0x44]] }
 0x126   :  { %s2860_s12 = sld [smem:[#allocation41_spill]]  ;;  %v592_v62 = vstv %s2857_s27 }
 0x127   :  { %s2861_s0 = sld [smem:[#allocation43_spill]] }
 0x128   :  { %s2862_s14 = sld [smem:[#allocation44_spill]] }
 0x129   :  { %2836 = sst [smem:[#allocation58_spill]] %s2091_s8 }
 0x12a   :  { %s2107_s8 = sld [smem:[#allocation13 + $0x15]]  ;;  %v608_v59 = vstv %s2858_s29 }
 0x12b   :  { %2859 = sst [smem:[#allocation26_spill]] %s2147_s10 }
 0x12c   :  { %s2153_s30 = sld [smem:[#allocation13 + $0x9]]  ;;  %v624_v22 = vstv %s2860_s12 }
 0x12d   :  { %s2864_s5 = sld [smem:[#allocation45_spill]]  ;;  %v656_v60 = vstv %s2861_s0 }
 0x12e   :  { %s2165_s10 = sld [smem:[#allocation13 + $0x18]]  ;;  %v866_v10 = vstv %s2862_s14 }
 0x12f   :  { %s2171_s20 = sld [smem:[#allocation13 + $0x27]] }
 0x130   :  { %s2868_s23 = sld [smem:[#allocation50_spill]] }
 0x131   :  { %s2869_s29 = sld [smem:[#allocation51_spill]] }
 0x132   :  { %2863 = sst [smem:[#allocation29_spill]] %s2153_s30 }
 0x133   :  { %v881_v7 = vstv %s2864_s5  ;;  %s2179_s27 = sld [smem:[#allocation13 + $0x36]] }
 0x134   :  { %2865 = sst [smem:[#allocation35_spill]] %s2165_s10 }
 0x135   :  { %s2871_s14 = sld [smem:[#allocation52_spill]] }
 0x136   :  { %s2191_s15 = sld [smem:[#allocation13 + $0x45]]  ;;  %v616_v54 = vstv %s2868_s23 }
 0x137   :  { %s2199_s12 = sld [smem:[#allocation13 + $0xc]]  ;;  %v632_v32 = vstv %s2869_s29 }
 0x138   :  { %s2217_s30 = sld [smem:[#allocation13 + $0x2a]] }
 0x139   :  { %2870 = sst [smem:[#allocation36_spill]] %s2179_s27 }
 0x13a   :  { %s2205_s27 = sld [smem:[#allocation13 + $0x1b]] }
 0x13b   :  { %v648_v40 = vstv %s2871_s14  ;;  %s2229_s0 = sld [smem:[#allocation13 + $0x39]] }
 0x13c   :  { %2873 = sst [smem:[#allocation37_spill]] %s2191_s15 }
 0x13d   :  { %2875 = sst [smem:[#allocation38_spill]] %s2199_s12 }
 0x13e   :  { %2877 = sst [smem:[#allocation65_spill]] %s2217_s30 }
 0x13f   :  { %s2241_s5 = sld [smem:[#allocation13 + $0x48]] }
 0x140   :  { %s2251_s23 = sld [smem:[#allocation13 + $0xe]] }
 0x141   :  { %2879 = sst [smem:[#allocation66_spill]] %s2229_s0  ;;  %v990_v14 = vstv %s2229_s0 }
 0x142   :  { %s2269_s11 = sld [smem:[#allocation13 + $0x1d]] }
 0x143   :  { %s2883_s16 = sld [smem:[#allocation60_spill]] }
 0x144   :  { %s2884_s1 = sld [smem:[#allocation61_spill]] }
 0x145   :  { %s2287_s22 = sld [smem:[#allocation13 + $0x2c]]  ;;  %v1005_v45 = vstv %s2241_s5  ;;  %s2977_s5 = smov 127  }
 0x146   :  { %2882 = sst [smem:[#allocation67_spill]] %s2251_s23  ;;  %v953_v36 = vstv %s2251_s23 }
 0x147   :  { %s2886_s4 = sld [smem:[#allocation62_spill]] }
 0x148   :  { %s2888_s14 = sld [smem:[#allocation64_spill]] }
 0x149   :  { %2889 = sst [smem:[#allocation61_spill]] %s2292_s26 }
 0x14a   :  { %s2890_s6 = sld [smem:[#allocation33_spill]] }
 0x14b   :  { %2885 = sst [smem:[#allocation60_spill]] %s2287_s22 }
 0x14c   :  { %s2894_s29 = sld [smem:[#allocation26_spill]] }
 0x14d   :  { %s2895_s26 = sld [smem:[#allocation29_spill]] }
 0x14e   :  { %s2311_s22 = sld [smem:[#allocation13 + $0x4a]] }
 0x14f   :  { %s2898_s3 = sld [smem:[#allocation61_spill]] }
 0x150   :  { %s2915_s24 = sld [smem:[#allocation46_spill]] }
 0x151   :  { %s2916_s7 = sld [smem:[#allocation47_spill]] }
 0x152   :  { %s2917_s17 = sld [smem:[#allocation53_spill]] }
 0x153   :  { %s2918_s15 = sld [smem:[#allocation59_spill]] }
 0x154   :  { %s2919_s10 = sld [smem:[#allocation48_spill]] }
 0x155   :  { %s2920_s12 = sld [smem:[#allocation54_spill]] }
 0x156   :  { %s2921_s0 = sld [smem:[#allocation55_spill]] }
 0x157   :  { %s2923_s30 = sld [smem:[#allocation56_spill]] }
 0x158   :  { %s2926_s23 = sld [smem:[#allocation57_spill]] }
 0x159   :  { %s2928_s28 = sld [smem:[#allocation58_spill]] }
 0x15a   :  { %s2577_s21 = sld [smem:[#allocation16 + $0x2]] }
 0x15b   :  { %s2579_s13 = sld [smem:[#allocation16 + $0x4]] }
 0x15c   :  { %s2583_s2 = sld [smem:[#allocation16 + $0x3]] }
 0x15d   :  { %s2587_s19 = sld [smem:[#allocation16 + $0xa]] }
 0x169   :  { %v679_v41 = vpop.permute.xlu1 %678  ;;  %v581_v63 = vpop.permute.xlu0 %580 }
 0x16a   :  { %v682_v31 = vsel %vm303_vm1, %v679_v41, %v1362_v0  ;;  %v585_v53 = vsel %vm296_vm0, %v1356_v1, %v581_v63 }
 0x16b   :  { %v593_v51 = vmul.f32 %v592_v62, %v585_v53  ;;  %v609_v48 = vmul.f32 %v608_v59, %v585_v53  ;;  %v625_v0 = vmul.f32 %v624_v22, %v585_v53  ;;  %v693_v58 = vmul.f32 %v692_v25, %v682_v31 }
 0x16c   :  { %v708_v63 = vmul.f32 %v707_v28, %v682_v31  ;;  %v641_v1 = vmul.f32 %v640_v26, %v585_v53  ;;  %v657_v17 = vmul.f32 %v656_v60, %v585_v53  ;;  %v723_v59 = vmul.f32 %v722_v29, %v682_v31 }
 0x16d   :  { %v853_v24 = vpop.permute.xlu1 %852  ;;  %v587_v62 = vpop.permute.xlu0 %586  ;;  %v738_v22 = vmul.f32 %v737_v33, %v682_v31  ;;  %v753_v25 = vmul.f32 %v752_v43, %v682_v31  ;;  %v598_v26 = vadd.f32 %v2176_v61, %v593_v51  ;;  %v614_v60 = vadd.f32 %v2182_v30, %v609_v48 }
 0x16e   :  { %v856_v28 = vsel %vm303_vm1, %v853_v24, %v1372_v46  ;;  %v630_v53 = vadd.f32 %v2185_v9, %v625_v0  ;;  %v646_v29 = vadd.f32 %v2188_v11, %v641_v1  ;;  %v662_v33 = vadd.f32 %v2195_v12, %v657_v17 }
 0x16f   :  { %v2389_v41 = vmul.f32 %v866_v10, %v856_v28  ;;  %v2393_v43 = vmul.f32 %v881_v7, %v856_v28  ;;  %v590_v61 = vsel %vm303_vm1, %v587_v62, %v1361_v3  ;;  %v2922_v17 = vstv %s2915_s24  ;;  %s2590_s24 = sld [smem:[#allocation16 + $0x5]] }
 0x170   :  { %v601_v30 = vmul.f32 %v600_v38, %v590_v61  ;;  %v617_v9 = vmul.f32 %v616_v54, %v590_v61  ;;  %v633_v11 = vmul.f32 %v632_v32, %v590_v61  ;;  %v649_v10 = vmul.f32 %v648_v40, %v590_v61 }
 0x171   :  { %v673_v7 = vpop.permute.xlu0 %672  ;;  %v2409_v37 = vmul.f32 %v2922_v17, %v856_v28  ;;  %v2924_v12 = vstv %s2916_s7  ;;  %v2925_v51 = vstv %s2917_s17  ;;  %v2927_v54 = vunpack.i.h.bf16 %v2101_v21  ;;  %s2595_s7 = sld [smem:[#allocation16 + $0xd]] }
 0x172   :  { %v2413_v3 = vmul.f32 %v2924_v12, %v856_v28  ;;  %v665_v38 = vmul.f32 %v2925_v51, %v590_v61  ;;  %v603_v46 = vadd.f32 %v601_v30, %v598_v26  ;;  %v619_v48 = vadd.f32 %v617_v9, %v614_v60  ;;  %s2599_s17 = sld [smem:[#allocation16 + $0x6]] }
 0x173   :  { %v677_v32 = vsel %vm296_vm0, %v2927_v54, %v673_v7  ;;  %v635_v40 = vadd.f32 %v633_v11, %v630_v53  ;;  %v651_v31 = vadd.f32 %v649_v10, %v646_v29  ;;  %v2929_v0 = vstv %s2918_s15  ;;  %s2606_s15 = sld [smem:[#allocation16 + $0x8]] }
 0x174   :  { %v667_v24 = vadd.f32 %v665_v38, %v662_v33  ;;  %v685_v1 = vmul.f32 %v2929_v0, %v677_v32  ;;  %v2930_v62 = vstv %s2095_s18  ;;  %v2931_v12 = vstv %s2097_s9  ;;  %s2937_s18 = sld [smem:[#allocation63_spill]] }
 0x175   :  { %v700_v17 = vmul.f32 %v2930_v62, %v677_v32  ;;  %v715_v18 = vmul.f32 %v2931_v12, %v677_v32  ;;  %v2932_v61 = vstv %s2919_s10  ;;  %v2933_v21 = vstv %s2920_s12  ;;  %v760_v29 = vpop.permute.xlu0 %759  ;;  %s2943_s9 = sld [smem:[#allocation34_spill]] }
 0x176   :  { %v2429_v51 = vmul.f32 %v2932_v61, %v856_v28  ;;  %v606_v7 = vadd.f32 %v2933_v21, %v603_v46  ;;  %v2934_v26 = vstv %s2921_s0  ;;  %v2935_v30 = vstv %s2923_s30  ;;  %s2611_s10 = sld [smem:[#allocation16 + $0xb]] }
 0x177   :  { %v622_v60 = vadd.f32 %v2934_v26, %v619_v48  ;;  %v638_v53 = vadd.f32 %v2935_v30, %v635_v40  ;;  %v2936_v9 = vstv %s2926_s23  ;;  %v690_v11 = vadd.f32 %v2212_v34, %v685_v1  ;;  %s2980_s30 = sld [smem:[#allocation68_spill]] }
 0x178   :  { %v654_v33 = vadd.f32 %v2936_v9, %v651_v31  ;;  %v705_v10 = vadd.f32 %v2215_v39, %v700_v17  ;;  %v720_v28 = vadd.f32 %v2221_v6, %v715_v18  ;;  %v2938_v38 = vstv %s2928_s28  ;;  %s2622_s23 = sld [smem:[#allocation16 + $0x9]] }
 0x179   :  { %v2444_v54 = vadd.f32 %v2938_v38, %v667_v24  ;;  %v2939_v46 = vstv %s2883_s16  ;;  %v2940_v0 = vstv %s2103_s25  ;;  %v2941_v62 = vunpack.i.l.bf16 %v2161_v4  ;;  %s2945_s16 = sld [smem:[#allocation24_spill]]  ;;  %v766_v26 = vpop.permute.xlu0 %765 }
 0x17a   :  { %v730_v48 = vmul.f32 %v2939_v46, %v677_v32  ;;  %v745_v40 = vmul.f32 %v2940_v0, %v677_v32  ;;  %v695_v12 = vadd.f32 %v693_v58, %v690_v11  ;;  %v710_v34 = vadd.f32 %v708_v63, %v705_v10  ;;  %s2947_s25 = sld [smem:[#allocation25_spill]] }
 0x17b   :  { %v764_v31 = vsel %vm296_vm0, %v2941_v62, %v760_v29  ;;  %v725_v1 = vadd.f32 %v723_v59, %v720_v28  ;;  %v2942_v39 = vstv %s2884_s1  ;;  %v2944_v24 = vstv %s2107_s8  ;;  %s2952_s8 = sld [smem:[#allocation35_spill]] }
 0x17c   :  { %v772_v17 = vmul.f32 %v2942_v39, %v764_v31  ;;  %v735_v6 = vadd.f32 %v2224_v2, %v730_v48  ;;  %v750_v18 = vadd.f32 %v2227_v42, %v745_v40  ;;  %v787_v61 = vmul.f32 %v2944_v24, %v764_v31  ;;  %s2966_s1 = sld [smem:[#allocation65_spill]] }
 0x17d   :  { %v2946_v32 = vstv %s2886_s4  ;;  %v2948_v63 = vstv %s2937_s18  ;;  %v2949_v30 = vstv %s2888_s14  ;;  %v2950_v9 = vunpack.i.l.bf16 %v2207_v35  ;;  %s2955_s4 = sld [smem:[#allocation36_spill]] }
 0x17e   :  { %v802_v21 = vmul.f32 %v2946_v32, %v764_v31  ;;  %v777_v58 = vadd.f32 %v2233_v5, %v772_v17  ;;  %v817_v59 = vmul.f32 %v2948_v63, %v764_v31  ;;  %v832_v29 = vmul.f32 %v2949_v30, %v764_v31  ;;  %s2957_s14 = sld [smem:[#allocation37_spill]] }
 0x17f   :  { %v769_v2 = vsel %vm303_vm1, %v766_v26, %v2950_v9  ;;  %v740_v42 = vadd.f32 %v738_v22, %v735_v6  ;;  %v2471_v11 = vadd.f32 %v753_v25, %v750_v18  ;;  %v792_v10 = vadd.f32 %v2236_v16, %v787_v61 }
 0x180   :  { %v807_v28 = vadd.f32 %v2239_v47, %v802_v21  ;;  %v822_v38 = vadd.f32 %v2249_v19, %v817_v59  ;;  %v837_v5 = vadd.f32 %v2257_v52, %v832_v29  ;;  %v2951_v46 = vstv %s2890_s6  ;;  %v847_v47 = vpop.permute.xlu0 %846 }
 0x181   :  { %v780_v48 = vmul.f32 %v2951_v46, %v769_v2  ;;  %v2953_v0 = vstv %s2943_s9  ;;  %v2954_v40 = vstv %s2945_s16  ;;  %v2956_v25 = vstv %s2947_s25  ;;  %s2640_s9 = sld [smem:[#allocation16 + $0xc]] }
 0x182   :  { %v795_v35 = vmul.f32 %v2953_v0, %v769_v2  ;;  %v810_v22 = vmul.f32 %v2954_v40, %v769_v2  ;;  %v825_v62 = vmul.f32 %v2956_v25, %v769_v2  ;;  %v2958_v16 = vstv %s2894_s29  ;;  %s2965_s29 = sld [smem:[#allocation38_spill]] }
 0x183   :  { %v840_v31 = vmul.f32 %v2958_v16, %v769_v2  ;;  %v712_v39 = vadd.f32 %v710_v34, %v622_v60  ;;  %v782_v19 = vadd.f32 %v780_v48, %v777_v58  ;;  %v2959_v52 = vunpack.i.h.bf16 %v2161_v4  ;;  %s2654_s16 = sld [smem:[#allocation16 + $0xe]] }
 0x184   :  { %v797_v17 = vadd.f32 %v795_v35, %v792_v10  ;;  %v697_v18 = vadd.f32 %v695_v12, %v606_v7  ;;  %v812_v24 = vadd.f32 %v810_v22, %v807_v28  ;;  %v827_v61 = vadd.f32 %v825_v62, %v822_v38  ;;  %v934_v58 = vpop.permute.xlu0 %933 }
 0x185   :  { %v851_v6 = vsel %vm296_vm0, %v2959_v52, %v847_v47  ;;  %v842_v32 = vadd.f32 %v840_v31, %v837_v5  ;;  %v2960_v21 = vstv %s2895_s26  ;;  %v2961_v63 = vstv %s2952_s8  ;;  %s2970_s26 = sld [smem:[#allocation60_spill]] }
 0x186   :  { %v859_v26 = vmul.f32 %v2960_v21, %v851_v6  ;;  %v874_v59 = vmul.f32 %v2961_v63, %v851_v6  ;;  %v2962_v30 = vstv %s2171_s20  ;;  %v2963_v9 = vstv %s2955_s4  ;;  %s1558_s4 = smov [#allocation17]  }
 0x187   :  { %v889_v29 = vmul.f32 %v2962_v30, %v851_v6  ;;  %v904_v2 = vmul.f32 %v2963_v9, %v851_v6  ;;  %v2964_v60 = vstv %s2957_s14  ;;  %v799_v7 = vadd.f32 %v797_v17, %v712_v39  ;;  %s1188_s14 = sshll.u32 %s1558_s4, 4  ;;  %s1189_s14 = int_to_ptr.vmem [resolvable:$true] %s1188_s14 }
 0x188   :  { %v919_v34 = vmul.f32 %v2964_v60, %v851_v6  ;;  %v864_v4 = vadd.f32 %v2262_v15, %v859_v26  ;;  %v784_v12 = vadd.f32 %v782_v19, %v697_v18  ;;  %v742_v10 = vadd.f32 %v740_v42, %v654_v33  ;;  %v942_v15 = vpop.permute.xlu1 %941  ;;  %v940_v25 = vpop.permute.xlu0 %939  ;;  %p1520_p13 = scmp.lt.s32.totalorder %s1189_s14, %s1189_s14 }
 0x189   :  { %v879_v28 = vadd.f32 %v2267_v44, %v874_v59  ;;  %v894_v38 = vadd.f32 %v2275_v49, %v889_v29  ;;  %v909_v5 = vadd.f32 %v2280_v20, %v904_v2  ;;  %v938_v48 = vsel %vm296_vm0, %v2289_v23, %v934_v58 }
 0x18a   :  { %v924_v46 = vadd.f32 %v2285_v50, %v919_v34  ;;  %v869_v0 = vadd.f32 %v2389_v41, %v864_v4  ;;  %v829_v35 = vadd.f32 %v827_v61, %v742_v10  ;;  %v727_v40 = vadd.f32 %v725_v1, %v638_v53 }
 0x18b   :  { %v2969_v33 = vstv %s2965_s29  ;;  %v2971_v42 = vstv %s2205_s27  ;;  %v2972_v20 = vstv %s2966_s1  ;;  %v991_v22 = vmul.f32 %v990_v14, %v938_v48  ;;  %s2978_s27 = smov 1   ;;  %s1515_s29 = scalar_lea.vmem %s1189_s14, 256 }
 0x18c   :  { %v946_v44 = vmul.f32 %v2969_v33, %v938_v48  ;;  %v961_v49 = vmul.f32 %v2971_v42, %v938_v48  ;;  %v976_v50 = vmul.f32 %v2972_v20, %v938_v48  ;;  %v1006_v23 = vmul.f32 %v1005_v45, %v938_v48  ;;  %p1516_p12 = scmp.ne.s32.totalorder %s1189_s14, %s1515_s29  ;;  %p1521_p0 = scmp.lt.s32.totalorder %s1515_s29, %s1515_s29 }
 0x18d   :  { %v884_v41 = vadd.f32 %v2393_v43, %v879_v28  ;;  %v871_v62 = vadd.f32 %v869_v0, %v784_v12  ;;  %v914_v16 = vadd.f32 %v2413_v3, %v909_v5  ;;  %v943_v53 = vsel %vm303_vm1, %v940_v25, %v942_v15 }
 0x18e   :  { %v966_v1 = vadd.f32 %v2297_v27, %v961_v49  ;;  %v951_v31 = vadd.f32 %v2302_v13, %v946_v44  ;;  %v996_v47 = vadd.f32 %v2307_v56, %v991_v22  ;;  %v954_v39 = vmul.f32 %v953_v36, %v943_v53  ;;  %p1522_p1 = por %p1521_p0, %p1520_p13 }
 0x18f   :  { %v2973_v14 = vstv %s2269_s11  ;;  %v2974_v45 = vstv %s2970_s26  ;;  %v2975_v52 = vstv %s2898_s3  ;;  %v2976_v6 = vstv %s2311_s22  ;;  %s2571_s11 = sld [smem:[#allocation16]] }
 0x190   :  { %v969_v19 = vmul.f32 %v2973_v14, %v943_v53  ;;  %v984_v17 = vmul.f32 %v2974_v45, %v943_v53  ;;  %v999_v43 = vmul.f32 %v2975_v52, %v943_v53  ;;  %v1014_v18 = vmul.f32 %v2976_v6, %v943_v53  ;;  %s2575_s22 = sld [smem:[#allocation16 + $0x1]]  ;;  %p1523_p2 = pnand %p1522_p1, %p1516_p12 }
 0x191   :  { %v886_v3 = vadd.f32 %v884_v41, %v799_v7  ;;  %v916_v61 = vadd.f32 %v914_v16, %v829_v35  ;;  %v814_v21 = vadd.f32 %v812_v24, %v727_v40  ;;  %v956_v63 = vadd.f32 %v954_v39, %v951_v31  ;;  %s2581_s3 = sld [smem:[#allocation16 + $0x7]] }
 0x192   :  { %v971_v26 = vadd.f32 %v969_v19, %v966_v1  ;;  %v1001_v27 = vadd.f32 %v999_v43, %v996_v47  ;;  %v899_v13 = vadd.f32 %v2409_v37, %v894_v38  ;;  %v981_v56 = vadd.f32 %v2316_v57, %v976_v50 }
 0x193   :  { %v757_v36 = vadd.f32 %v2471_v11, %v2444_v54  ;;  %v929_v59 = vadd.f32 %v2429_v51, %v924_v46  ;;  %v1011_v30 = vadd.f32 %v2321_v55, %v1006_v23  ;;  %v958_v9 = vadd.f32 %v956_v63, %v871_v62 }
 0x194   :  { %v973_v29 = vadd.f32 %v971_v26, %v886_v3  ;;  %v1003_v2 = vadd.f32 %v1001_v27, %v916_v61  ;;  %v901_v60 = vadd.f32 %v899_v13, %v814_v21  ;;  %v986_v34 = vadd.f32 %v984_v17, %v981_v56 }
 0x195   :  { %v844_v24 = vadd.f32 %v842_v32, %v757_v36  ;;  %v1016_v4 = vadd.f32 %v1014_v18, %v1011_v30  ;;  %v1020_v7 = vmax.f32 %v958_v9, 0.0  ;;  %v2979_v55 = vmov 0.0   ;;  %v1375_v32 = vpop.permute.xlu1 %1374 }
 0x196   :  { %v1024_v58 = vmax.f32 %v973_v29, 0.0  ;;  %v988_v12 = vadd.f32 %v986_v34, %v901_v60  ;;  %v2545_v54 = vmax.f32 %v1003_v2, 0.0  ;;  %v1376_v5 = vunpack.i.l.bf16 %v1375_v32 }
 0x197   :  { %v931_v37 = vadd.f32 %v929_v59, %v844_v24  ;;  %1040 = vrot.lane.b32.xlu0 %v1020_v7, %s2978_s27  ;;  %v1052_v0 = vstv %s2571_s11  ;;  %v1055_v40 = vstv %s2575_s22  ;;  %v1060_v33 = vstv %s2577_s21 }
 0x198   :  { %1074 = vrot.lane.b32.xlu1 %v1024_v58, %s2977_s5  ;;  %v2553_v51 = vmax.f32 %v988_v12, 0.0  ;;  %v1056_v22 = vmul.f32 %v1055_v40, %v1020_v7  ;;  %v1377_v25 = vunpack.i.h.bf16 %v1375_v32  ;;  %v1080_v41 = vstv %s2583_s2 }
 0x199   :  { %v1018_v57 = vadd.f32 %v1016_v4, %v931_v37  ;;  %v2567_v10 = vpop.permute.xlu1 %1379  ;;  %v1083_v62 = vstv %s2579_s13  ;;  %v1088_v1 = vstv %s2590_s24  ;;  %v1110_v39 = vstv %s2581_s3 }
 0x19a   :  { %v1381_v15 = vunpack.i.l.bf16 %v2567_v10  ;;  %v1382_v49 = vunpack.i.h.bf16 %v2567_v10  ;;  %v1084_v19 = vmul.f32 %v1083_v62, %v1024_v58  ;;  %v1137_v17 = vstv %s2587_s19 }
 0x19b   :  { %1046 = vrot.lane.b32.xlu0 %v1020_v7, %s2977_s5  ;;  %v2561_v11 = vmax.f32 %v1018_v57, 0.0  ;;  %v1065_v43 = vstv %s2980_s30  ;;  %v1107_v6 = vstv %s2599_s17  ;;  %v1164_v18 = vstv %s2595_s7 }
 0x19c   :  { %1128 = vrot.lane.b32.xlu1 %v2545_v54, %s2977_s5  ;;  %v1057_v56 = vmul.f32 0.0, %v1055_v40  ;;  %v1085_v60 = vmul.f32 0.0, %v1083_v62  ;;  %v1115_v24 = vstv %s2606_s15  ;;  %v1134_v40 = vstv %s2622_s23 }
 0x19d   :  { %v2569_v28 = vpop.permute.xlu1 %1384  ;;  %v1138_v62 = vmul.f32 %v1137_v17, %v2545_v54 }
 0x19e   :  { %v1386_v52 = vunpack.i.l.bf16 %v2569_v28  ;;  %v1387_v27 = vunpack.i.h.bf16 %v2569_v28 }
 0x19f   :  { %1068 = vrot.lane.b32.xlu0 %v1024_v58, %s2978_s27  ;;  %v1111_v58 = vmul.f32 %v1110_v39, %v2553_v51 }
 0x1a0   :  { %1157 = vrot.lane.b32.xlu1 %v2979_v55, %s2977_s5  ;;  %v1142_v55 = vstv %s2611_s10 }
 0x1a1   :  { %v2573_v38 = vpop.permute.xlu1 %1389 }
 0x1a2   :  { %v1391_v13 = vunpack.i.l.bf16 %v2573_v38  ;;  %v1392_v4 = vunpack.i.h.bf16 %v2573_v38 }
 0x1a3   :  { %1095 = vrot.lane.b32.xlu0 %v2553_v51, %s2978_s27 }
 0x1a5   :  { %v2585_v46 = vpop.permute.xlu1 %1151 }
 0x1a7   :  { %1101 = vrot.lane.b32.xlu0 %v2553_v51, %s2977_s5 }
 0x1ab   :  { %1122 = vrot.lane.b32.xlu0 %v2545_v54, %s2978_s27 }
 0x1af   :  { %1149 = vrot.lane.b32.xlu0 %v2561_v11, %s2978_s27 }
 0x1b3   :  { %1155 = vrot.lane.b32.xlu0 %v2561_v11, %s2977_s5 }
 0x209   :  { %v1041_v48 = vpop.permute.xlu0 %1040 }
 0x20a   :  { %v1045_v35 = vsel %vm296_vm0, %v1376_v5, %v1041_v48  ;;  %v1075_v50 = vpop.permute.xlu1 %1074  ;;  %v1044_v61 = vsel %vm296_vm0, %v1041_v48, %v1376_v5  ;;  %v1112_v5 = vmul.f32 0.0, %v1110_v39  ;;  %v1161_v39 = vstv %s2640_s9 }
 0x20b   :  { %v1053_v44 = vmul.f32 %v1052_v0, %v1045_v35  ;;  %v1078_v31 = vsel %vm303_vm1, %v1075_v50, %v1382_v49  ;;  %v1054_v2 = vmul.f32 %v1052_v0, %v1044_v61  ;;  %v1079_v57 = vsel %vm303_vm1, %v1382_v49, %v1075_v50 }
 0x20c   :  { %v1089_v3 = vmul.f32 %v1088_v1, %v1078_v31  ;;  %v1139_v49 = vmul.f32 0.0, %v1137_v17 }
 0x20d   :  { %v1047_v42 = vpop.permute.xlu0 %1046  ;;  %v1058_v16 = vadd.f32 %v1056_v22, %v1053_v44  ;;  %v1090_v44 = vmul.f32 %v1088_v1, %v1079_v57 }
 0x20e   :  { %v1050_v20 = vsel %vm303_vm1, %v1047_v42, %v1381_v15  ;;  %v1051_v59 = vsel %vm303_vm1, %v1381_v15, %v1047_v42  ;;  %v1129_v32 = vpop.permute.xlu1 %1128  ;;  %v1059_v15 = vadd.f32 %v1057_v56, %v1054_v2 }
 0x20f   :  { %v1061_v23 = vmul.f32 %v1060_v33, %v1050_v20  ;;  %v1062_v10 = vmul.f32 %v1060_v33, %v1051_v59  ;;  %v1132_v33 = vsel %vm303_vm1, %v1129_v32, %v1392_v4  ;;  %v1133_v1 = vsel %vm303_vm1, %v1392_v4, %v1129_v32 }
 0x211   :  { %v1069_v53 = vpop.permute.xlu0 %1068  ;;  %v1063_v14 = vadd.f32 %v1061_v23, %v1058_v16  ;;  %v1064_v50 = vadd.f32 %v1062_v10, %v1059_v15 }
 0x212   :  { %v1073_v47 = vsel %vm296_vm0, %v1377_v25, %v1069_v53  ;;  %v1072_v21 = vsel %vm296_vm0, %v1069_v53, %v1377_v25 }
 0x213   :  { %v1081_v45 = vmul.f32 %v1080_v41, %v1073_v47  ;;  %v1066_v30 = vadd.f32 %v1065_v43, %v1063_v14  ;;  %v1082_v34 = vmul.f32 %v1080_v41, %v1072_v21  ;;  %v1143_v14 = vmul.f32 %v1142_v55, %v1132_v33 }
 0x214   :  { %v1067_v54 = vadd.f32 %v1065_v43, %v1064_v50  ;;  %v1144_v21 = vmul.f32 %v1142_v55, %v1133_v1  ;;  %v1165_v43 = vmul.f32 %v1164_v18, %v2561_v11  ;;  %v1394_v55 = vld [vmem:[#allocation3 + $0x8] sm:$0xff] }
 0x215   :  { %v1086_v26 = vadd.f32 %v1084_v19, %v1081_v45  ;;  %v1096_v63 = vpop.permute.xlu0 %1095  ;;  %v1087_v0 = vadd.f32 %v1085_v60, %v1082_v34 }
 0x216   :  { %v1100_v36 = vsel %vm296_vm0, %v1386_v52, %v1096_v63  ;;  %v1099_v7 = vsel %vm296_vm0, %v1096_v63, %v1386_v52  ;;  %v1166_v52 = vmul.f32 0.0, %v1164_v18  ;;  %v1393_v18 = vld [vmem:[#allocation3] sm:$0xff] }
 0x217   :  { %v1091_v29 = vadd.f32 %v1089_v3, %v1086_v26  ;;  %v1108_v9 = vmul.f32 %v1107_v6, %v1100_v36  ;;  %v1109_v35 = vmul.f32 %v1107_v6, %v1099_v7  ;;  %v1092_v31 = vadd.f32 %v1090_v44, %v1087_v0 }
 0x218   :  { %v1169_v36 = vstv %s2654_s16 }
 0x219   :  { %v1102_v12 = vpop.permute.xlu0 %1101  ;;  %v1093_v37 = vadd.f32 %v1091_v29, %v1066_v30  ;;  %v1113_v48 = vadd.f32 %v1111_v58, %v1108_v9  ;;  %v1114_v47 = vadd.f32 %v1112_v5, %v1109_v35  ;;  %v1094_v56 = vadd.f32 %v1092_v31, %v1067_v54 }
 0x21a   :  { %v1105_v28 = vsel %vm303_vm1, %v1102_v12, %v1391_v13  ;;  %v1106_v51 = vsel %vm303_vm1, %v1391_v13, %v1102_v12  ;;  %v1158_v13 = vpop.permute.xlu1 %1157 }
 0x21b   :  { %v1116_v38 = vmul.f32 %v1115_v24, %v1105_v28  ;;  %v1117_v22 = vmul.f32 %v1115_v24, %v1106_v51 }
 0x21d   :  { %v1118_v42 = vadd.f32 %v1116_v38, %v1113_v48  ;;  %v1123_v20 = vpop.permute.xlu0 %1122  ;;  %v1119_v17 = vadd.f32 %v1117_v22, %v1114_v47 }
 0x21e   :  { %v1126_v23 = vsel %vm296_vm0, %v1123_v20, %v1387_v27  ;;  %v1127_v25 = vsel %vm296_vm0, %v1387_v27, %v1123_v20 }
 0x21f   :  { %v1120_v41 = vadd.f32 %v1118_v42, %v1093_v37  ;;  %v1135_v16 = vmul.f32 %v1134_v40, %v1127_v25  ;;  %v1136_v53 = vmul.f32 %v1134_v40, %v1126_v23  ;;  %v1121_v9 = vadd.f32 %v1119_v17, %v1094_v56 }
 0x221   :  { %v1140_v19 = vadd.f32 %v1138_v62, %v1135_v16  ;;  %v1141_v45 = vadd.f32 %v1139_v49, %v1136_v53  ;;  %v1150_v6 = vpop.permute.xlu0 %1149 }
 0x222   :  { %v1153_v3 = vsel %vm296_vm0, %v1150_v6, %v2585_v46  ;;  %v1154_v61 = vsel %vm296_vm0, %v2585_v46, %v1150_v6 }
 0x223   :  { %v1145_v26 = vadd.f32 %v1143_v14, %v1140_v19  ;;  %v1162_v63 = vmul.f32 %v1161_v39, %v1154_v61  ;;  %v1163_v27 = vmul.f32 %v1161_v39, %v1153_v3  ;;  %v1146_v59 = vadd.f32 %v1144_v21, %v1141_v45 }
 0x225   :  { %v1156_v30 = vpop.permute.xlu0 %1155  ;;  %v1147_v29 = vadd.f32 %v1145_v26, %v1120_v41  ;;  %v1167_v60 = vadd.f32 %v1165_v43, %v1162_v63  ;;  %v1168_v34 = vadd.f32 %v1166_v52, %v1163_v27  ;;  %v1148_v12 = vadd.f32 %v1146_v59, %v1121_v9 }
 0x226   :  { %v1159_v2 = vsel %vm303_vm1, %v1156_v30, %v1158_v13  ;;  %v1160_v46 = vsel %vm303_vm1, %v1158_v13, %v1156_v30 }
 0x227   :  { %v1170_v24 = vmul.f32 %v1169_v36, %v1159_v2  ;;  %v1171_v4 = vmul.f32 %v1169_v36, %v1160_v46 }
 0x229   :  { %v1172_v58 = vadd.f32 %v1170_v24, %v1167_v60  ;;  %v1173_v7 = vadd.f32 %v1171_v4, %v1168_v34 }
 0x22b   :  { %v1174_v37 = vadd.f32 %v1172_v58, %v1147_v29  ;;  %v1175_v11 = vadd.f32 %v1173_v7, %v1148_v12 }
 0x22d   :  { %v1176_v57 = vadd.f32 %v1393_v18, %v1174_v37  ;;  %v1177_v32 = vadd.f32 %v1394_v55, %v1175_v11 }
 0x22f   :  { %1180 = vst [vmem:[#allocation17] sm:$0xff] %v1176_v57  ;;  %1181 = vst [vmem:[#allocation17 + $0x8] sm:$0xff] %v1177_v32 }
 0x230   :  { %1526 = shalt.err (!%p1523_p2)
}
 0x231   :  { %s2981_s20 = sld [smem:[#allocation69_spill]] }
 0x237   :  { %1191 = dma.vmem_to_hbm [thread:$0]  %s1189_s14, 256, %s2981_s20, [#allocation5]  }
 0x238   :  { %1545 = dma.done.wait [#allocation5], 256  }
 0x239   :  { %1546 = vsyncadd [#allocation5], 4294967040 }
 0x23a   :  { %1195 = vsyncpa [#allocation4], 1 }
 0x23b   :  { %1196 = vsyncpa [#allocation8], 1 }
 0x23c   :  { %1197 = vsyncpa [#allocation5], 1 }
 0x23d   :  { %1198 = vsyncpa [#allocation6], 1 }
 0x23e   :  { %1199 = vsyncpa [#allocation12], 1 }
 0x23f   :  { %1200 = vsyncpa [#allocation15], 1 }

</bundles_post_ra>
